<compile_context>
chip_gen: v7x
topology: tpu7x:2x2x1
jax: 0.10.0
libtpu: 0.0.40
codegen_flags: <defaults>
</compile_context>

<pallas_src>
import math
from functools import partial

import jax
import jax.numpy as jnp
import numpy as np
from jax.experimental import pallas as pl
from jax.experimental.pallas import tpu as pltpu


# -----------------------------------------------------------------------------
# Exact (erf-based) GELU.  nn.GELU() default uses erf; lax.erf may not lower in
# Mosaic, so we use the Abramowitz & Stegun 7.1.26 polynomial (~1.5e-7 abs err).
# TODO(synk): switch to lax.erf once a Mosaic lowering for erf is guaranteed.
# -----------------------------------------------------------------------------
def _erf_approx(x):
    p = 0.3275911
    a1, a2, a3, a4, a5 = (0.254829592, -0.284496736, 1.421413741,
                          -1.453152027, 1.061405429)
    s = jnp.where(x >= 0.0, 1.0, -1.0)
    ax = jnp.abs(x)
    t = 1.0 / (1.0 + p * ax)
    poly = ((((a5 * t + a4) * t + a3) * t + a2) * t + a1) * t
    return s * (1.0 - poly * jnp.exp(-ax * ax))


def _gelu_exact(x):
    return 0.5 * x * (1.0 + _erf_approx(x * 0.7071067811865476))


def _round8(n):
    return ((n + 7) // 8) * 8


# -----------------------------------------------------------------------------
# Adaptive average pooling as a pooling matrix (rows sum to 1), exactly like
# torch.nn.AdaptiveAvgPool2d: row i averages indices [floor(i*In/Out),
# ceil((i+1)*In/Out)).
# -----------------------------------------------------------------------------
def adaptive_pool_matrix(in_size, out_size):
    P = np.zeros((out_size, in_size), dtype=np.float32)
    for i in range(out_size):
        s = (i * in_size) // out_size
        e = -((-(i + 1) * in_size) // out_size)  # ceil
        P[i, s:e] = 1.0 / float(e - s)
    return P


# -----------------------------------------------------------------------------
# Wrapper: constant folding + one ungridded pallas_call (shapes are tiny; the
# kernel is latency-bound, so the goal is minimum DMAs / minimum serial ops).
# -----------------------------------------------------------------------------
@partial(jax.jit, static_argnames=("time_length",))
def gcn_net_forward(adjacency, flow_x, params, time_length=10):
    B, N, T, C = flow_x.shape
    Q = params["lin_w"].shape[0]
    TL = time_length
    K = C * T * N              # per-direction contraction length of the fused matmul
    R = 2 * B                  # recurrence rows: (direction, batch)
    GTL = 4 * TL               # lane-major gates: lane 4*t + g
    Q2 = 2 * Q
    f32 = jnp.float32
    hi = jax.lax.Precision.HIGHEST

    adjacency = adjacency.astype(f32)
    flow_x = flow_x.astype(f32)

    # --- compile-time pooling matrices (rows sum to 1) ---
    PN = adaptive_pool_matrix(N, 4)                    # (4, N)
    PT = adaptive_pool_matrix(T, TL)                   # (TL, T)

    # --- fold GCN weight + adjacency + node/time pooling + LSTM input proj ---
    adj_pn = jnp.dot(jnp.asarray(PN), adjacency, precision=hi).T     # (N, 4)
    gw = params["gcn_w"].reshape(C).astype(f32)
    gb = params["gcn_b"].reshape(()).astype(f32)

    # per-gate pre-scale so sigmoid(x) == 0.5*(tanh(x/2)+1) needs no extra mul
    gate_scale = jnp.asarray([0.5, 0.5, 1.0, 0.5], f32)               # i, f, g, o
    col_scale = jnp.tile(gate_scale, TL)                              # (4*TL,)

    def fused_matrix(wih, pt_d):
        aw = jnp.dot(adj_pn, wih.T, precision=hi)                     # (N, 4)
        # pure outer product (no contraction): exact in f32
        m = jnp.einsum("c,tu,ng->cuntg", gw, jnp.asarray(pt_d), aw)   # (C,T,N,TL,4)
        return m.reshape(K, GTL) * col_scale[None, :]

    bigm = jnp.concatenate(
        [fused_matrix(params["wih_f"], PT),
         fused_matrix(params["wih_b"], PT[::-1, :])], axis=0)         # (2K, 4*TL)

    def gate_bias(wih, b_ih, b_hh):
        b = b_ih + b_hh + gb * jnp.sum(wih, axis=1)                   # (4,)
        return jnp.tile(b * gate_scale, TL)                           # (4*TL,)

    bias2 = jnp.concatenate(
        [jnp.tile(gate_bias(params["wih_f"], params["b_ih_f"],
                            params["b_hh_f"])[None, :], (B, 1)),
         jnp.tile(gate_bias(params["wih_b"], params["b_ih_b"],
                            params["b_hh_b"])[None, :], (B, 1))], axis=0)   # (2B, 4*TL)

    whh2 = jnp.concatenate(
        [jnp.tile(params["whh_f"].reshape(1, 4) * gate_scale, (B, 1)),
         jnp.tile(params["whh_b"].reshape(1, 4) * gate_scale, (B, 1))],
        axis=0)                                                       # (2B, 4)

    lw_t = params["lin_w"].T.astype(f32)                              # (TL, Q)
    # columns [0:Q] apply lin_w in natural time (forward rows), columns [Q:2Q]
    # apply it time-reversed (backward rows, whose h_t is original time TL-1-t).
    wcat = jnp.concatenate([lw_t, lw_t[::-1, :]], axis=1)             # (TL, 2Q)
    acc0 = jnp.tile(jnp.concatenate([params["lin_b"], params["lin_b"]])[None, :],
                    (R, 1)).astype(f32)                               # (2B, 2Q)

    # --- one (rows, 128) f32 slab: single DMA for every tiny constant ---
    o_bias = 0
    o_whh = o_bias + _round8(R)
    o_wcat = o_whh + _round8(R)
    o_acc = o_wcat + _round8(TL)
    slab_rows = o_acc + _round8(R)
    slab = jnp.zeros((slab_rows, 128), f32)
    slab = slab.at[o_bias:o_bias + R, 0:GTL].set(bias2)
    slab = slab.at[o_whh:o_whh + R, 0:4].set(whh2)
    slab = slab.at[o_wcat:o_wcat + TL, 0:Q2].set(wcat)
    slab = slab.at[o_acc:o_acc + R, 0:Q2].set(acc0)

    # --- data: per-batch features in bigm's row order; forward/backward blocks
    #     zero-separated so one matmul emits the (2B, TL*4) gates directly.
    flow_flat = jnp.transpose(flow_x, (0, 3, 2, 1)).reshape(B, K)     # (B, C*T*N)
    zeros = jnp.zeros_like(flow_flat)
    feat2 = jnp.concatenate(
        [jnp.concatenate([flow_flat, zeros], axis=1),
         jnp.concatenate([zeros, flow_flat], axis=1)], axis=0)        # (2B, 2K)

    def kernel(feat2_ref, bigm_ref, slab_ref, out_ref):
        consts = slab_ref[...]                                        # tiny, few vregs
        bias = consts[o_bias:o_bias + R, 0:GTL]
        whh = consts[o_whh:o_whh + R, 0:4]
        wc = consts[o_wcat:o_wcat + TL, 0:Q2]
        acc = consts[o_acc:o_acc + R, 0:Q2]                           # Linear bias init

        # single MXU contraction: GCN + adjacency + pooling + LSTM input proj
        zg = jnp.dot(feat2_ref[...], bigm_ref[...],
                     preferred_element_type=jnp.float32) + bias       # (2B, TL*4)

        h = jnp.zeros((R, 1), jnp.float32)
        c = jnp.zeros((R, 1), jnp.float32)
        # TL is small: keep the static unroll (a visible non-unrolled loop would
        # hide the schedule from the LLO scheduler).
        for t in range(TL):
            a = jnp.tanh(zg[:, 4 * t:4 * t + 4] + h * whh)            # one EUP tanh
            i_g = 0.5 * (a[:, 0:1] + 1.0)                             # == sigmoid
            f_g = 0.5 * (a[:, 1:2] + 1.0)
            g_g = a[:, 2:3]
            o_g = 0.5 * (a[:, 3:4] + 1.0)
            c = f_g * c + i_g * g_g
            h = o_g * jnp.tanh(c)
            # GELU + Linear as a VPU broadcast-FMA, off the serial h/c chain
            acc = acc + _gelu_exact(h) * wc[t:t + 1, :]
        out_ref[...] = jnp.maximum(acc, 0.0)                          # single store

    vmem = pl.BlockSpec(memory_space=pltpu.MemorySpace.VMEM)
    raw = pl.pallas_call(
        kernel,
        out_shape=jax.ShapeDtypeStruct((R, Q2), jnp.float32),
        in_specs=[vmem, vmem, vmem],
        out_specs=vmem,
    )(feat2, bigm, slab)

    # rows 0:B / cols 0:Q -> forward direction, rows B:2B / cols Q:2Q -> backward
    out_f = raw[0:B, 0:Q]
    out_b = raw[B:R, Q:Q2]
    return jnp.transpose(jnp.stack([out_f, out_b], axis=0), (2, 1, 0))   # (Q, B, 2)


# -----------------------------------------------------------------------------
# Pure-JAX reference (mirrors the PyTorch forward, for verification).
# -----------------------------------------------------------------------------
def reference_forward(adjacency, flow_x, p, time_length=10):
    feature = jnp.transpose(flow_x, (0, 1, 3, 2))            # (B, N, C, T)
    B, N, C, T = feature.shape
    cols = []
    for t in range(T):
        x = feature[:, :, :, t]                               # (B, N, C)
        support = jnp.einsum("bnc,co->bno", x, p["gcn_w"])
        out = jnp.einsum("nm,bmo->bno", adjacency, support) + p["gcn_b"]
        cols.append(out)
    xA = jnp.concatenate(cols, axis=2)                        # (B, N, T)

    PN = jnp.asarray(adaptive_pool_matrix(N, 4))
    PT = jnp.asarray(adaptive_pool_matrix(T, time_length))
    pooled = jnp.einsum("pn,bnt,qt->bpq", PN, xA, PT)         # (B, 4, TL)
    seq = jnp.transpose(pooled, (2, 0, 1))                    # (TL, B, 4)

    def run(wih, whh, b_ih, b_hh, xs):
        h = jnp.zeros((B, 1), jnp.float32)
        c = jnp.zeros((B, 1), jnp.float32)
        outs = []
        for x in xs:
            z = x @ wih.T + h @ whh.T + b_ih + b_hh
            i = jax.nn.sigmoid(z[:, 0:1]); f = jax.nn.sigmoid(z[:, 1:2])
            g = jnp.tanh(z[:, 2:3]);       o = jax.nn.sigmoid(z[:, 3:4])
            c = f * c + i * g
            h = o * jnp.tanh(c)
            outs.append(h)
        return outs

    fwd = run(p["wih_f"], p["whh_f"], p["b_ih_f"], p["b_hh_f"],
              [seq[t] for t in range(time_length)])
    bwd_rev = run(p["wih_b"], p["whh_b"], p["b_ih_b"], p["b_hh_b"],
                  [seq[t] for t in range(time_length - 1, -1, -1)])
    bwd = bwd_rev[::-1]
    lstm_out = jnp.stack(
        [jnp.concatenate([fwd[t], bwd[t]], axis=1) for t in range(time_length)],
        axis=0)                                               # (TL, B, 2)

    y = jax.nn.gelu(lstm_out, approximate=False)
    y = jnp.transpose(y, (2, 1, 0))                           # (2, B, TL)
    y = y @ p["lin_w"].T + p["lin_b"]                         # (2, B, Q)
    y = jnp.maximum(y, 0.0)
    return jnp.transpose(y, (2, 1, 0))                        # (Q, B, 2)


# -----------------------------------------------------------------------------
# Deterministic parameter init (shapes from GcnNet.__init__).
# -----------------------------------------------------------------------------
def init_params(key, input_dim=2, time_length=10, quantile_list_num=11):
    ks = jax.random.split(key, 11)
    p = {}
    bound = math.sqrt(6.0 / input_dim)
    p["gcn_w"] = jax.random.uniform(ks[0], (input_dim, 1), jnp.float32, -bound, bound)
    p["gcn_b"] = jnp.zeros((1,), jnp.float32)
    k = 1.0  # 1/sqrt(hidden_size=1)
    p["wih_f"] = jax.random.uniform(ks[1], (4, 4), jnp.float32, -k, k)
    p["whh_f"] = jax.random.uniform(ks[2], (4, 1), jnp.float32, -k, k)
    p["b_ih_f"] = jax.random.uniform(ks[3], (4,), jnp.float32, -k, k)
    p["b_hh_f"] = jax.random.uniform(ks[4], (4,), jnp.float32, -k, k)
    p["wih_b"] = jax.random.uniform(ks[5], (4, 4), jnp.float32, -k, k)
    p["whh_b"] = jax.random.uniform(ks[6], (4, 1), jnp.float32, -k, k)
    p["b_ih_b"] = jax.random.uniform(ks[7], (4,), jnp.float32, -k, k)
    p["b_hh_b"] = jax.random.uniform(ks[10], (4,), jnp.float32, -k, k)
    kl = 1.0 / math.sqrt(time_length)
    p["lin_w"] = jax.random.uniform(ks[8], (quantile_list_num, time_length),
                                    jnp.float32, -kl, kl)
    p["lin_b"] = jax.random.uniform(ks[9], (quantile_list_num,),
                                    jnp.float32, -kl, kl)
    return p


if __name__ == "__main__":
    B, N, T_RAW, C = 2, 8, 12, 2
    TIME_LENGTH, QUANTILES = 10, 11

    key = jax.random.PRNGKey(0)
    kp, ka, kx = jax.random.split(key, 3)

    params = init_params(kp, C, TIME_LENGTH, QUANTILES)

    adjacency = jax.random.uniform(ka, (N, N), jnp.float32)
    adjacency = adjacency / jnp.sum(adjacency, axis=1, keepdims=True)
    flow_x = jax.random.normal(kx, (B, N, T_RAW, C), jnp.float32)

    out = gcn_net_forward(adjacency, flow_x, params, time_length=TIME_LENGTH)
    out = jax.block_until_ready(out)
    assert out.shape == (QUANTILES, B, 2), out.shape

    ref = reference_forward(adjacency, flow_x, params, time_length=TIME_LENGTH)
    np.testing.assert_allclose(np.asarray(out), np.asarray(ref),
                               rtol=1e-4, atol=1e-4)
    print("KERNEL_OK")
</pallas_src>

<mosaic_0001>
module attributes {stable_mosaic.version = 11 : i64} {
  func.func @kernel(%arg0: memref<4x384xf32, #tpu.memory_space<vmem>>, %arg1: memref<384x40xf32, #tpu.memory_space<vmem>>, %arg2: memref<40x128xf32, #tpu.memory_space<vmem>>, %arg3: memref<4x22xf32, #tpu.memory_space<vmem>>) attributes {dimension_semantics = [], scalar_prefetch = 0 : i64, scratch_operands = 0 : i64, tpu.core_type = #tpu.core_type<tc>} {
    %c0 = arith.constant 0 : index
    %c0_0 = arith.constant 0 : index
    %0 = vector.load %arg2[%c0, %c0_0] : memref<40x128xf32, #tpu.memory_space<vmem>>, vector<40x128xf32>
    %1 = vector.extract_strided_slice %0 {offsets = [0, 0], sizes = [4, 40], strides = [1, 1]} : vector<40x128xf32> to vector<4x40xf32>
    %2 = vector.extract_strided_slice %0 {offsets = [8, 0], sizes = [4, 4], strides = [1, 1]} : vector<40x128xf32> to vector<4x4xf32>
    %3 = vector.extract_strided_slice %0 {offsets = [16, 0], sizes = [10, 22], strides = [1, 1]} : vector<40x128xf32> to vector<10x22xf32>
    %4 = vector.extract_strided_slice %0 {offsets = [32, 0], sizes = [4, 22], strides = [1, 1]} : vector<40x128xf32> to vector<4x22xf32>
    %c0_1 = arith.constant 0 : index
    %c0_2 = arith.constant 0 : index
    %5 = vector.load %arg0[%c0_1, %c0_2] : memref<4x384xf32, #tpu.memory_space<vmem>>, vector<4x384xf32>
    %c0_3 = arith.constant 0 : index
    %c0_4 = arith.constant 0 : index
    %6 = vector.load %arg1[%c0_3, %c0_4] : memref<384x40xf32, #tpu.memory_space<vmem>>, vector<384x40xf32>
    %cst = arith.constant dense<0.000000e+00> : vector<4x40xf32>
    %7 = tpu.matmul %5, %6, %cst {dimension_numbers = #tpu.dot_dimension_numbers<[1], [0], [0], [1], [0, 0, 1, 1], [], []>} : vector<4x384xf32>, vector<384x40xf32>, vector<4x40xf32> -> vector<4x40xf32>
    %8 = arith.addf %7, %1 : vector<4x40xf32>
    %cst_5 = arith.constant 0.000000e+00 : f32
    %9 = vector.broadcast %cst_5 : f32 to vector<4x1xf32>
    %cst_6 = arith.constant 0.000000e+00 : f32
    %10 = vector.broadcast %cst_6 : f32 to vector<4x1xf32>
    %11 = vector.extract_strided_slice %8 {offsets = [0, 0], sizes = [4, 4], strides = [1, 1]} : vector<4x40xf32> to vector<4x4xf32>
    %12 = vector.broadcast %9 : vector<4x1xf32> to vector<4x4xf32>
    %13 = arith.mulf %12, %2 : vector<4x4xf32>
    %14 = arith.addf %11, %13 : vector<4x4xf32>
    %15 = math.tanh %14 : vector<4x4xf32>
    %16 = vector.extract_strided_slice %15 {offsets = [0, 0], sizes = [4, 1], strides = [1, 1]} : vector<4x4xf32> to vector<4x1xf32>
    %cst_7 = arith.constant 1.000000e+00 : f32
    %17 = vector.broadcast %cst_7 : f32 to vector<4x1xf32>
    %18 = arith.addf %16, %17 : vector<4x1xf32>
    %cst_8 = arith.constant 5.000000e-01 : f32
    %19 = vector.broadcast %cst_8 : f32 to vector<4x1xf32>
    %20 = arith.mulf %19, %18 : vector<4x1xf32>
    %21 = vector.extract_strided_slice %15 {offsets = [0, 1], sizes = [4, 1], strides = [1, 1]} : vector<4x4xf32> to vector<4x1xf32>
    %cst_9 = arith.constant 1.000000e+00 : f32
    %22 = vector.broadcast %cst_9 : f32 to vector<4x1xf32>
    %23 = arith.addf %21, %22 : vector<4x1xf32>
    %cst_10 = arith.constant 5.000000e-01 : f32
    %24 = vector.broadcast %cst_10 : f32 to vector<4x1xf32>
    %25 = arith.mulf %24, %23 : vector<4x1xf32>
    %26 = vector.extract_strided_slice %15 {offsets = [0, 2], sizes = [4, 1], strides = [1, 1]} : vector<4x4xf32> to vector<4x1xf32>
    %27 = vector.extract_strided_slice %15 {offsets = [0, 3], sizes = [4, 1], strides = [1, 1]} : vector<4x4xf32> to vector<4x1xf32>
    %cst_11 = arith.constant 1.000000e+00 : f32
    %28 = vector.broadcast %cst_11 : f32 to vector<4x1xf32>
    %29 = arith.addf %27, %28 : vector<4x1xf32>
    %cst_12 = arith.constant 5.000000e-01 : f32
    %30 = vector.broadcast %cst_12 : f32 to vector<4x1xf32>
    %31 = arith.mulf %30, %29 : vector<4x1xf32>
    %32 = arith.mulf %25, %10 : vector<4x1xf32>
    %33 = arith.mulf %20, %26 : vector<4x1xf32>
    %34 = arith.addf %32, %33 : vector<4x1xf32>
    %35 = math.tanh %34 : vector<4x1xf32>
    %36 = arith.mulf %31, %35 : vector<4x1xf32>
    %cst_13 = arith.constant 5.000000e-01 : f32
    %37 = vector.broadcast %cst_13 : f32 to vector<4x1xf32>
    %38 = arith.mulf %37, %36 : vector<4x1xf32>
    %cst_14 = arith.constant 0.707106769 : f32
    %39 = vector.broadcast %cst_14 : f32 to vector<4x1xf32>
    %40 = arith.mulf %36, %39 : vector<4x1xf32>
    %cst_15 = arith.constant 0.000000e+00 : f32
    %41 = vector.broadcast %cst_15 : f32 to vector<4x1xf32>
    %42 = arith.cmpf oge, %40, %41 : vector<4x1xf32>
    %cst_16 = arith.constant 1.000000e+00 : f32
    %cst_17 = arith.constant -1.000000e+00 : f32
    %43 = vector.broadcast %cst_16 : f32 to vector<4x1xf32>
    %44 = vector.broadcast %cst_17 : f32 to vector<4x1xf32>
    %45 = arith.select %42, %43, %44 : vector<4x1xi1>, vector<4x1xf32>
    %46 = math.absf %40 : vector<4x1xf32>
    %cst_18 = arith.constant 0.327591091 : f32
    %47 = vector.broadcast %cst_18 : f32 to vector<4x1xf32>
    %48 = arith.mulf %47, %46 : vector<4x1xf32>
    %cst_19 = arith.constant 1.000000e+00 : f32
    %49 = vector.broadcast %cst_19 : f32 to vector<4x1xf32>
    %50 = arith.addf %49, %48 : vector<4x1xf32>
    %cst_20 = arith.constant 1.000000e+00 : f32
    %51 = vector.broadcast %cst_20 : f32 to vector<4x1xf32>
    %52 = arith.divf %51, %50 : vector<4x1xf32>
    %cst_21 = arith.constant 1.06140542 : f32
    %53 = vector.broadcast %cst_21 : f32 to vector<4x1xf32>
    %54 = arith.mulf %53, %52 : vector<4x1xf32>
    %cst_22 = arith.constant -1.45315206 : f32
    %55 = vector.broadcast %cst_22 : f32 to vector<4x1xf32>
    %56 = arith.addf %54, %55 : vector<4x1xf32>
    %57 = arith.mulf %56, %52 : vector<4x1xf32>
    %cst_23 = arith.constant 1.42141378 : f32
    %58 = vector.broadcast %cst_23 : f32 to vector<4x1xf32>
    %59 = arith.addf %57, %58 : vector<4x1xf32>
    %60 = arith.mulf %59, %52 : vector<4x1xf32>
    %cst_24 = arith.constant -0.284496725 : f32
    %61 = vector.broadcast %cst_24 : f32 to vector<4x1xf32>
    %62 = arith.addf %60, %61 : vector<4x1xf32>
    %63 = arith.mulf %62, %52 : vector<4x1xf32>
    %cst_25 = arith.constant 0.254829586 : f32
    %64 = vector.broadcast %cst_25 : f32 to vector<4x1xf32>
    %65 = arith.addf %63, %64 : vector<4x1xf32>
    %66 = arith.mulf %65, %52 : vector<4x1xf32>
    %cst_26 = arith.constant 0.000000e+00 : f32
    %67 = vector.broadcast %cst_26 : f32 to vector<4x1xf32>
    %68 = arith.subf %67, %46 : vector<4x1xf32>
    %69 = arith.mulf %68, %46 : vector<4x1xf32>
    %70 = math.exp %69 : vector<4x1xf32>
    %71 = arith.mulf %66, %70 : vector<4x1xf32>
    %cst_27 = arith.constant 1.000000e+00 : f32
    %72 = vector.broadcast %cst_27 : f32 to vector<4x1xf32>
    %73 = arith.subf %72, %71 : vector<4x1xf32>
    %74 = arith.mulf %45, %73 : vector<4x1xf32>
    %cst_28 = arith.constant 1.000000e+00 : f32
    %75 = vector.broadcast %cst_28 : f32 to vector<4x1xf32>
    %76 = arith.addf %75, %74 : vector<4x1xf32>
    %77 = arith.mulf %38, %76 : vector<4x1xf32>
    %78 = vector.extract_strided_slice %3 {offsets = [0, 0], sizes = [1, 22], strides = [1, 1]} : vector<10x22xf32> to vector<1x22xf32>
    %79 = vector.broadcast %77 : vector<4x1xf32> to vector<4x22xf32>
    %80 = vector.broadcast %78 : vector<1x22xf32> to vector<4x22xf32>
    %81 = arith.mulf %79, %80 : vector<4x22xf32>
    %82 = arith.addf %4, %81 : vector<4x22xf32>
    %83 = vector.extract_strided_slice %8 {offsets = [0, 4], sizes = [4, 4], strides = [1, 1]} : vector<4x40xf32> to vector<4x4xf32>
    %84 = vector.broadcast %36 : vector<4x1xf32> to vector<4x4xf32>
    %85 = arith.mulf %84, %2 : vector<4x4xf32>
    %86 = arith.addf %83, %85 : vector<4x4xf32>
    %87 = math.tanh %86 : vector<4x4xf32>
    %88 = vector.extract_strided_slice %87 {offsets = [0, 0], sizes = [4, 1], strides = [1, 1]} : vector<4x4xf32> to vector<4x1xf32>
    %cst_29 = arith.constant 1.000000e+00 : f32
    %89 = vector.broadcast %cst_29 : f32 to vector<4x1xf32>
    %90 = arith.addf %88, %89 : vector<4x1xf32>
    %cst_30 = arith.constant 5.000000e-01 : f32
    %91 = vector.broadcast %cst_30 : f32 to vector<4x1xf32>
    %92 = arith.mulf %91, %90 : vector<4x1xf32>
    %93 = vector.extract_strided_slice %87 {offsets = [0, 1], sizes = [4, 1], strides = [1, 1]} : vector<4x4xf32> to vector<4x1xf32>
    %cst_31 = arith.constant 1.000000e+00 : f32
    %94 = vector.broadcast %cst_31 : f32 to vector<4x1xf32>
    %95 = arith.addf %93, %94 : vector<4x1xf32>
    %cst_32 = arith.constant 5.000000e-01 : f32
    %96 = vector.broadcast %cst_32 : f32 to vector<4x1xf32>
    %97 = arith.mulf %96, %95 : vector<4x1xf32>
    %98 = vector.extract_strided_slice %87 {offsets = [0, 2], sizes = [4, 1], strides = [1, 1]} : vector<4x4xf32> to vector<4x1xf32>
    %99 = vector.extract_strided_slice %87 {offsets = [0, 3], sizes = [4, 1], strides = [1, 1]} : vector<4x4xf32> to vector<4x1xf32>
    %cst_33 = arith.constant 1.000000e+00 : f32
    %100 = vector.broadcast %cst_33 : f32 to vector<4x1xf32>
    %101 = arith.addf %99, %100 : vector<4x1xf32>
    %cst_34 = arith.constant 5.000000e-01 : f32
    %102 = vector.broadcast %cst_34 : f32 to vector<4x1xf32>
    %103 = arith.mulf %102, %101 : vector<4x1xf32>
    %104 = arith.mulf %97, %34 : vector<4x1xf32>
    %105 = arith.mulf %92, %98 : vector<4x1xf32>
    %106 = arith.addf %104, %105 : vector<4x1xf32>
    %107 = math.tanh %106 : vector<4x1xf32>
    %108 = arith.mulf %103, %107 : vector<4x1xf32>
    %cst_35 = arith.constant 5.000000e-01 : f32
    %109 = vector.broadcast %cst_35 : f32 to vector<4x1xf32>
    %110 = arith.mulf %109, %108 : vector<4x1xf32>
    %cst_36 = arith.constant 0.707106769 : f32
    %111 = vector.broadcast %cst_36 : f32 to vector<4x1xf32>
    %112 = arith.mulf %108, %111 : vector<4x1xf32>
    %cst_37 = arith.constant 0.000000e+00 : f32
    %113 = vector.broadcast %cst_37 : f32 to vector<4x1xf32>
    %114 = arith.cmpf oge, %112, %113 : vector<4x1xf32>
    %cst_38 = arith.constant 1.000000e+00 : f32
    %cst_39 = arith.constant -1.000000e+00 : f32
    %115 = vector.broadcast %cst_38 : f32 to vector<4x1xf32>
    %116 = vector.broadcast %cst_39 : f32 to vector<4x1xf32>
    %117 = arith.select %114, %115, %116 : vector<4x1xi1>, vector<4x1xf32>
    %118 = math.absf %112 : vector<4x1xf32>
    %cst_40 = arith.constant 0.327591091 : f32
    %119 = vector.broadcast %cst_40 : f32 to vector<4x1xf32>
    %120 = arith.mulf %119, %118 : vector<4x1xf32>
    %cst_41 = arith.constant 1.000000e+00 : f32
    %121 = vector.broadcast %cst_41 : f32 to vector<4x1xf32>
    %122 = arith.addf %121, %120 : vector<4x1xf32>
    %cst_42 = arith.constant 1.000000e+00 : f32
    %123 = vector.broadcast %cst_42 : f32 to vector<4x1xf32>
    %124 = arith.divf %123, %122 : vector<4x1xf32>
    %cst_43 = arith.constant 1.06140542 : f32
    %125 = vector.broadcast %cst_43 : f32 to vector<4x1xf32>
    %126 = arith.mulf %125, %124 : vector<4x1xf32>
    %cst_44 = arith.constant -1.45315206 : f32
    %127 = vector.broadcast %cst_44 : f32 to vector<4x1xf32>
    %128 = arith.addf %126, %127 : vector<4x1xf32>
    %129 = arith.mulf %128, %124 : vector<4x1xf32>
    %cst_45 = arith.constant 1.42141378 : f32
    %130 = vector.broadcast %cst_45 : f32 to vector<4x1xf32>
    %131 = arith.addf %129, %130 : vector<4x1xf32>
    %132 = arith.mulf %131, %124 : vector<4x1xf32>
    %cst_46 = arith.constant -0.284496725 : f32
    %133 = vector.broadcast %cst_46 : f32 to vector<4x1xf32>
    %134 = arith.addf %132, %133 : vector<4x1xf32>
    %135 = arith.mulf %134, %124 : vector<4x1xf32>
    %cst_47 = arith.constant 0.254829586 : f32
    %136 = vector.broadcast %cst_47 : f32 to vector<4x1xf32>
    %137 = arith.addf %135, %136 : vector<4x1xf32>
    %138 = arith.mulf %137, %124 : vector<4x1xf32>
    %cst_48 = arith.constant 0.000000e+00 : f32
    %139 = vector.broadcast %cst_48 : f32 to vector<4x1xf32>
    %140 = arith.subf %139, %118 : vector<4x1xf32>
    %141 = arith.mulf %140, %118 : vector<4x1xf32>
    %142 = math.exp %141 : vector<4x1xf32>
    %143 = arith.mulf %138, %142 : vector<4x1xf32>
    %cst_49 = arith.constant 1.000000e+00 : f32
    %144 = vector.broadcast %cst_49 : f32 to vector<4x1xf32>
    %145 = arith.subf %144, %143 : vector<4x1xf32>
    %146 = arith.mulf %117, %145 : vector<4x1xf32>
    %cst_50 = arith.constant 1.000000e+00 : f32
    %147 = vector.broadcast %cst_50 : f32 to vector<4x1xf32>
    %148 = arith.addf %147, %146 : vector<4x1xf32>
    %149 = arith.mulf %110, %148 : vector<4x1xf32>
    %150 = vector.extract_strided_slice %3 {offsets = [1, 0], sizes = [1, 22], strides = [1, 1]} : vector<10x22xf32> to vector<1x22xf32>
    %151 = vector.broadcast %149 : vector<4x1xf32> to vector<4x22xf32>
    %152 = vector.broadcast %150 : vector<1x22xf32> to vector<4x22xf32>
    %153 = arith.mulf %151, %152 : vector<4x22xf32>
    %154 = arith.addf %82, %153 : vector<4x22xf32>
    %155 = vector.extract_strided_slice %8 {offsets = [0, 8], sizes = [4, 4], strides = [1, 1]} : vector<4x40xf32> to vector<4x4xf32>
    %156 = vector.broadcast %108 : vector<4x1xf32> to vector<4x4xf32>
    %157 = arith.mulf %156, %2 : vector<4x4xf32>
    %158 = arith.addf %155, %157 : vector<4x4xf32>
    %159 = math.tanh %158 : vector<4x4xf32>
    %160 = vector.extract_strided_slice %159 {offsets = [0, 0], sizes = [4, 1], strides = [1, 1]} : vector<4x4xf32> to vector<4x1xf32>
    %cst_51 = arith.constant 1.000000e+00 : f32
    %161 = vector.broadcast %cst_51 : f32 to vector<4x1xf32>
    %162 = arith.addf %160, %161 : vector<4x1xf32>
    %cst_52 = arith.constant 5.000000e-01 : f32
    %163 = vector.broadcast %cst_52 : f32 to vector<4x1xf32>
    %164 = arith.mulf %163, %162 : vector<4x1xf32>
    %165 = vector.extract_strided_slice %159 {offsets = [0, 1], sizes = [4, 1], strides = [1, 1]} : vector<4x4xf32> to vector<4x1xf32>
    %cst_53 = arith.constant 1.000000e+00 : f32
    %166 = vector.broadcast %cst_53 : f32 to vector<4x1xf32>
    %167 = arith.addf %165, %166 : vector<4x1xf32>
    %cst_54 = arith.constant 5.000000e-01 : f32
    %168 = vector.broadcast %cst_54 : f32 to vector<4x1xf32>
    %169 = arith.mulf %168, %167 : vector<4x1xf32>
    %170 = vector.extract_strided_slice %159 {offsets = [0, 2], sizes = [4, 1], strides = [1, 1]} : vector<4x4xf32> to vector<4x1xf32>
    %171 = vector.extract_strided_slice %159 {offsets = [0, 3], sizes = [4, 1], strides = [1, 1]} : vector<4x4xf32> to vector<4x1xf32>
    %cst_55 = arith.constant 1.000000e+00 : f32
    %172 = vector.broadcast %cst_55 : f32 to vector<4x1xf32>
    %173 = arith.addf %171, %172 : vector<4x1xf32>
    %cst_56 = arith.constant 5.000000e-01 : f32
    %174 = vector.broadcast %cst_56 : f32 to vector<4x1xf32>
    %175 = arith.mulf %174, %173 : vector<4x1xf32>
    %176 = arith.mulf %169, %106 : vector<4x1xf32>
    %177 = arith.mulf %164, %170 : vector<4x1xf32>
    %178 = arith.addf %176, %177 : vector<4x1xf32>
    %179 = math.tanh %178 : vector<4x1xf32>
    %180 = arith.mulf %175, %179 : vector<4x1xf32>
    %cst_57 = arith.constant 5.000000e-01 : f32
    %181 = vector.broadcast %cst_57 : f32 to vector<4x1xf32>
    %182 = arith.mulf %181, %180 : vector<4x1xf32>
    %cst_58 = arith.constant 0.707106769 : f32
    %183 = vector.broadcast %cst_58 : f32 to vector<4x1xf32>
    %184 = arith.mulf %180, %183 : vector<4x1xf32>
    %cst_59 = arith.constant 0.000000e+00 : f32
    %185 = vector.broadcast %cst_59 : f32 to vector<4x1xf32>
    %186 = arith.cmpf oge, %184, %185 : vector<4x1xf32>
    %cst_60 = arith.constant 1.000000e+00 : f32
    %cst_61 = arith.constant -1.000000e+00 : f32
    %187 = vector.broadcast %cst_60 : f32 to vector<4x1xf32>
    %188 = vector.broadcast %cst_61 : f32 to vector<4x1xf32>
    %189 = arith.select %186, %187, %188 : vector<4x1xi1>, vector<4x1xf32>
    %190 = math.absf %184 : vector<4x1xf32>
    %cst_62 = arith.constant 0.327591091 : f32
    %191 = vector.broadcast %cst_62 : f32 to vector<4x1xf32>
    %192 = arith.mulf %191, %190 : vector<4x1xf32>
    %cst_63 = arith.constant 1.000000e+00 : f32
    %193 = vector.broadcast %cst_63 : f32 to vector<4x1xf32>
    %194 = arith.addf %193, %192 : vector<4x1xf32>
    %cst_64 = arith.constant 1.000000e+00 : f32
    %195 = vector.broadcast %cst_64 : f32 to vector<4x1xf32>
    %196 = arith.divf %195, %194 : vector<4x1xf32>
    %cst_65 = arith.constant 1.06140542 : f32
    %197 = vector.broadcast %cst_65 : f32 to vector<4x1xf32>
    %198 = arith.mulf %197, %196 : vector<4x1xf32>
    %cst_66 = arith.constant -1.45315206 : f32
    %199 = vector.broadcast %cst_66 : f32 to vector<4x1xf32>
    %200 = arith.addf %198, %199 : vector<4x1xf32>
    %201 = arith.mulf %200, %196 : vector<4x1xf32>
    %cst_67 = arith.constant 1.42141378 : f32
    %202 = vector.broadcast %cst_67 : f32 to vector<4x1xf32>
    %203 = arith.addf %201, %202 : vector<4x1xf32>
    %204 = arith.mulf %203, %196 : vector<4x1xf32>
    %cst_68 = arith.constant -0.284496725 : f32
    %205 = vector.broadcast %cst_68 : f32 to vector<4x1xf32>
    %206 = arith.addf %204, %205 : vector<4x1xf32>
    %207 = arith.mulf %206, %196 : vector<4x1xf32>
    %cst_69 = arith.constant 0.254829586 : f32
    %208 = vector.broadcast %cst_69 : f32 to vector<4x1xf32>
    %209 = arith.addf %207, %208 : vector<4x1xf32>
    %210 = arith.mulf %209, %196 : vector<4x1xf32>
    %cst_70 = arith.constant 0.000000e+00 : f32
    %211 = vector.broadcast %cst_70 : f32 to vector<4x1xf32>
    %212 = arith.subf %211, %190 : vector<4x1xf32>
    %213 = arith.mulf %212, %190 : vector<4x1xf32>
    %214 = math.exp %213 : vector<4x1xf32>
    %215 = arith.mulf %210, %214 : vector<4x1xf32>
    %cst_71 = arith.constant 1.000000e+00 : f32
    %216 = vector.broadcast %cst_71 : f32 to vector<4x1xf32>
    %217 = arith.subf %216, %215 : vector<4x1xf32>
    %218 = arith.mulf %189, %217 : vector<4x1xf32>
    %cst_72 = arith.constant 1.000000e+00 : f32
    %219 = vector.broadcast %cst_72 : f32 to vector<4x1xf32>
    %220 = arith.addf %219, %218 : vector<4x1xf32>
    %221 = arith.mulf %182, %220 : vector<4x1xf32>
    %222 = vector.extract_strided_slice %3 {offsets = [2, 0], sizes = [1, 22], strides = [1, 1]} : vector<10x22xf32> to vector<1x22xf32>
    %223 = vector.broadcast %221 : vector<4x1xf32> to vector<4x22xf32>
    %224 = vector.broadcast %222 : vector<1x22xf32> to vector<4x22xf32>
    %225 = arith.mulf %223, %224 : vector<4x22xf32>
    %226 = arith.addf %154, %225 : vector<4x22xf32>
    %227 = vector.extract_strided_slice %8 {offsets = [0, 12], sizes = [4, 4], strides = [1, 1]} : vector<4x40xf32> to vector<4x4xf32>
    %228 = vector.broadcast %180 : vector<4x1xf32> to vector<4x4xf32>
    %229 = arith.mulf %228, %2 : vector<4x4xf32>
    %230 = arith.addf %227, %229 : vector<4x4xf32>
    %231 = math.tanh %230 : vector<4x4xf32>
    %232 = vector.extract_strided_slice %231 {offsets = [0, 0], sizes = [4, 1], strides = [1, 1]} : vector<4x4xf32> to vector<4x1xf32>
    %cst_73 = arith.constant 1.000000e+00 : f32
    %233 = vector.broadcast %cst_73 : f32 to vector<4x1xf32>
    %234 = arith.addf %232, %233 : vector<4x1xf32>
    %cst_74 = arith.constant 5.000000e-01 : f32
    %235 = vector.broadcast %cst_74 : f32 to vector<4x1xf32>
    %236 = arith.mulf %235, %234 : vector<4x1xf32>
    %237 = vector.extract_strided_slice %231 {offsets = [0, 1], sizes = [4, 1], strides = [1, 1]} : vector<4x4xf32> to vector<4x1xf32>
    %cst_75 = arith.constant 1.000000e+00 : f32
    %238 = vector.broadcast %cst_75 : f32 to vector<4x1xf32>
    %239 = arith.addf %237, %238 : vector<4x1xf32>
    %cst_76 = arith.constant 5.000000e-01 : f32
    %240 = vector.broadcast %cst_76 : f32 to vector<4x1xf32>
    %241 = arith.mulf %240, %239 : vector<4x1xf32>
    %242 = vector.extract_strided_slice %231 {offsets = [0, 2], sizes = [4, 1], strides = [1, 1]} : vector<4x4xf32> to vector<4x1xf32>
    %243 = vector.extract_strided_slice %231 {offsets = [0, 3], sizes = [4, 1], strides = [1, 1]} : vector<4x4xf32> to vector<4x1xf32>
    %cst_77 = arith.constant 1.000000e+00 : f32
    %244 = vector.broadcast %cst_77 : f32 to vector<4x1xf32>
    %245 = arith.addf %243, %244 : vector<4x1xf32>
    %cst_78 = arith.constant 5.000000e-01 : f32
    %246 = vector.broadcast %cst_78 : f32 to vector<4x1xf32>
    %247 = arith.mulf %246, %245 : vector<4x1xf32>
    %248 = arith.mulf %241, %178 : vector<4x1xf32>
    %249 = arith.mulf %236, %242 : vector<4x1xf32>
    %250 = arith.addf %248, %249 : vector<4x1xf32>
    %251 = math.tanh %250 : vector<4x1xf32>
    %252 = arith.mulf %247, %251 : vector<4x1xf32>
    %cst_79 = arith.constant 5.000000e-01 : f32
    %253 = vector.broadcast %cst_79 : f32 to vector<4x1xf32>
    %254 = arith.mulf %253, %252 : vector<4x1xf32>
    %cst_80 = arith.constant 0.707106769 : f32
    %255 = vector.broadcast %cst_80 : f32 to vector<4x1xf32>
    %256 = arith.mulf %252, %255 : vector<4x1xf32>
    %cst_81 = arith.constant 0.000000e+00 : f32
    %257 = vector.broadcast %cst_81 : f32 to vector<4x1xf32>
    %258 = arith.cmpf oge, %256, %257 : vector<4x1xf32>
    %cst_82 = arith.constant 1.000000e+00 : f32
    %cst_83 = arith.constant -1.000000e+00 : f32
    %259 = vector.broadcast %cst_82 : f32 to vector<4x1xf32>
    %260 = vector.broadcast %cst_83 : f32 to vector<4x1xf32>
    %261 = arith.select %258, %259, %260 : vector<4x1xi1>, vector<4x1xf32>
    %262 = math.absf %256 : vector<4x1xf32>
    %cst_84 = arith.constant 0.327591091 : f32
    %263 = vector.broadcast %cst_84 : f32 to vector<4x1xf32>
    %264 = arith.mulf %263, %262 : vector<4x1xf32>
    %cst_85 = arith.constant 1.000000e+00 : f32
    %265 = vector.broadcast %cst_85 : f32 to vector<4x1xf32>
    %266 = arith.addf %265, %264 : vector<4x1xf32>
    %cst_86 = arith.constant 1.000000e+00 : f32
    %267 = vector.broadcast %cst_86 : f32 to vector<4x1xf32>
    %268 = arith.divf %267, %266 : vector<4x1xf32>
    %cst_87 = arith.constant 1.06140542 : f32
    %269 = vector.broadcast %cst_87 : f32 to vector<4x1xf32>
    %270 = arith.mulf %269, %268 : vector<4x1xf32>
    %cst_88 = arith.constant -1.45315206 : f32
    %271 = vector.broadcast %cst_88 : f32 to vector<4x1xf32>
    %272 = arith.addf %270, %271 : vector<4x1xf32>
    %273 = arith.mulf %272, %268 : vector<4x1xf32>
    %cst_89 = arith.constant 1.42141378 : f32
    %274 = vector.broadcast %cst_89 : f32 to vector<4x1xf32>
    %275 = arith.addf %273, %274 : vector<4x1xf32>
    %276 = arith.mulf %275, %268 : vector<4x1xf32>
    %cst_90 = arith.constant -0.284496725 : f32
    %277 = vector.broadcast %cst_90 : f32 to vector<4x1xf32>
    %278 = arith.addf %276, %277 : vector<4x1xf32>
    %279 = arith.mulf %278, %268 : vector<4x1xf32>
    %cst_91 = arith.constant 0.254829586 : f32
    %280 = vector.broadcast %cst_91 : f32 to vector<4x1xf32>
    %281 = arith.addf %279, %280 : vector<4x1xf32>
    %282 = arith.mulf %281, %268 : vector<4x1xf32>
    %cst_92 = arith.constant 0.000000e+00 : f32
    %283 = vector.broadcast %cst_92 : f32 to vector<4x1xf32>
    %284 = arith.subf %283, %262 : vector<4x1xf32>
    %285 = arith.mulf %284, %262 : vector<4x1xf32>
    %286 = math.exp %285 : vector<4x1xf32>
    %287 = arith.mulf %282, %286 : vector<4x1xf32>
    %cst_93 = arith.constant 1.000000e+00 : f32
    %288 = vector.broadcast %cst_93 : f32 to vector<4x1xf32>
    %289 = arith.subf %288, %287 : vector<4x1xf32>
    %290 = arith.mulf %261, %289 : vector<4x1xf32>
    %cst_94 = arith.constant 1.000000e+00 : f32
    %291 = vector.broadcast %cst_94 : f32 to vector<4x1xf32>
    %292 = arith.addf %291, %290 : vector<4x1xf32>
    %293 = arith.mulf %254, %292 : vector<4x1xf32>
    %294 = vector.extract_strided_slice %3 {offsets = [3, 0], sizes = [1, 22], strides = [1, 1]} : vector<10x22xf32> to vector<1x22xf32>
    %295 = vector.broadcast %293 : vector<4x1xf32> to vector<4x22xf32>
    %296 = vector.broadcast %294 : vector<1x22xf32> to vector<4x22xf32>
    %297 = arith.mulf %295, %296 : vector<4x22xf32>
    %298 = arith.addf %226, %297 : vector<4x22xf32>
    %299 = vector.extract_strided_slice %8 {offsets = [0, 16], sizes = [4, 4], strides = [1, 1]} : vector<4x40xf32> to vector<4x4xf32>
    %300 = vector.broadcast %252 : vector<4x1xf32> to vector<4x4xf32>
    %301 = arith.mulf %300, %2 : vector<4x4xf32>
    %302 = arith.addf %299, %301 : vector<4x4xf32>
    %303 = math.tanh %302 : vector<4x4xf32>
    %304 = vector.extract_strided_slice %303 {offsets = [0, 0], sizes = [4, 1], strides = [1, 1]} : vector<4x4xf32> to vector<4x1xf32>
    %cst_95 = arith.constant 1.000000e+00 : f32
    %305 = vector.broadcast %cst_95 : f32 to vector<4x1xf32>
    %306 = arith.addf %304, %305 : vector<4x1xf32>
    %cst_96 = arith.constant 5.000000e-01 : f32
    %307 = vector.broadcast %cst_96 : f32 to vector<4x1xf32>
    %308 = arith.mulf %307, %306 : vector<4x1xf32>
    %309 = vector.extract_strided_slice %303 {offsets = [0, 1], sizes = [4, 1], strides = [1, 1]} : vector<4x4xf32> to vector<4x1xf32>
    %cst_97 = arith.constant 1.000000e+00 : f32
    %310 = vector.broadcast %cst_97 : f32 to vector<4x1xf32>
    %311 = arith.addf %309, %310 : vector<4x1xf32>
    %cst_98 = arith.constant 5.000000e-01 : f32
    %312 = vector.broadcast %cst_98 : f32 to vector<4x1xf32>
    %313 = arith.mulf %312, %311 : vector<4x1xf32>
    %314 = vector.extract_strided_slice %303 {offsets = [0, 2], sizes = [4, 1], strides = [1, 1]} : vector<4x4xf32> to vector<4x1xf32>
    %315 = vector.extract_strided_slice %303 {offsets = [0, 3], sizes = [4, 1], strides = [1, 1]} : vector<4x4xf32> to vector<4x1xf32>
    %cst_99 = arith.constant 1.000000e+00 : f32
    %316 = vector.broadcast %cst_99 : f32 to vector<4x1xf32>
    %317 = arith.addf %315, %316 : vector<4x1xf32>
    %cst_100 = arith.constant 5.000000e-01 : f32
    %318 = vector.broadcast %cst_100 : f32 to vector<4x1xf32>
    %319 = arith.mulf %318, %317 : vector<4x1xf32>
    %320 = arith.mulf %313, %250 : vector<4x1xf32>
    %321 = arith.mulf %308, %314 : vector<4x1xf32>
    %322 = arith.addf %320, %321 : vector<4x1xf32>
    %323 = math.tanh %322 : vector<4x1xf32>
    %324 = arith.mulf %319, %323 : vector<4x1xf32>
    %cst_101 = arith.constant 5.000000e-01 : f32
    %325 = vector.broadcast %cst_101 : f32 to vector<4x1xf32>
    %326 = arith.mulf %325, %324 : vector<4x1xf32>
    %cst_102 = arith.constant 0.707106769 : f32
    %327 = vector.broadcast %cst_102 : f32 to vector<4x1xf32>
    %328 = arith.mulf %324, %327 : vector<4x1xf32>
    %cst_103 = arith.constant 0.000000e+00 : f32
    %329 = vector.broadcast %cst_103 : f32 to vector<4x1xf32>
    %330 = arith.cmpf oge, %328, %329 : vector<4x1xf32>
    %cst_104 = arith.constant 1.000000e+00 : f32
    %cst_105 = arith.constant -1.000000e+00 : f32
    %331 = vector.broadcast %cst_104 : f32 to vector<4x1xf32>
    %332 = vector.broadcast %cst_105 : f32 to vector<4x1xf32>
    %333 = arith.select %330, %331, %332 : vector<4x1xi1>, vector<4x1xf32>
    %334 = math.absf %328 : vector<4x1xf32>
    %cst_106 = arith.constant 0.327591091 : f32
    %335 = vector.broadcast %cst_106 : f32 to vector<4x1xf32>
    %336 = arith.mulf %335, %334 : vector<4x1xf32>
    %cst_107 = arith.constant 1.000000e+00 : f32
    %337 = vector.broadcast %cst_107 : f32 to vector<4x1xf32>
    %338 = arith.addf %337, %336 : vector<4x1xf32>
    %cst_108 = arith.constant 1.000000e+00 : f32
    %339 = vector.broadcast %cst_108 : f32 to vector<4x1xf32>
    %340 = arith.divf %339, %338 : vector<4x1xf32>
    %cst_109 = arith.constant 1.06140542 : f32
    %341 = vector.broadcast %cst_109 : f32 to vector<4x1xf32>
    %342 = arith.mulf %341, %340 : vector<4x1xf32>
    %cst_110 = arith.constant -1.45315206 : f32
    %343 = vector.broadcast %cst_110 : f32 to vector<4x1xf32>
    %344 = arith.addf %342, %343 : vector<4x1xf32>
    %345 = arith.mulf %344, %340 : vector<4x1xf32>
    %cst_111 = arith.constant 1.42141378 : f32
    %346 = vector.broadcast %cst_111 : f32 to vector<4x1xf32>
    %347 = arith.addf %345, %346 : vector<4x1xf32>
    %348 = arith.mulf %347, %340 : vector<4x1xf32>
    %cst_112 = arith.constant -0.284496725 : f32
    %349 = vector.broadcast %cst_112 : f32 to vector<4x1xf32>
    %350 = arith.addf %348, %349 : vector<4x1xf32>
    %351 = arith.mulf %350, %340 : vector<4x1xf32>
    %cst_113 = arith.constant 0.254829586 : f32
    %352 = vector.broadcast %cst_113 : f32 to vector<4x1xf32>
    %353 = arith.addf %351, %352 : vector<4x1xf32>
    %354 = arith.mulf %353, %340 : vector<4x1xf32>
    %cst_114 = arith.constant 0.000000e+00 : f32
    %355 = vector.broadcast %cst_114 : f32 to vector<4x1xf32>
    %356 = arith.subf %355, %334 : vector<4x1xf32>
    %357 = arith.mulf %356, %334 : vector<4x1xf32>
    %358 = math.exp %357 : vector<4x1xf32>
    %359 = arith.mulf %354, %358 : vector<4x1xf32>
    %cst_115 = arith.constant 1.000000e+00 : f32
    %360 = vector.broadcast %cst_115 : f32 to vector<4x1xf32>
    %361 = arith.subf %360, %359 : vector<4x1xf32>
    %362 = arith.mulf %333, %361 : vector<4x1xf32>
    %cst_116 = arith.constant 1.000000e+00 : f32
    %363 = vector.broadcast %cst_116 : f32 to vector<4x1xf32>
    %364 = arith.addf %363, %362 : vector<4x1xf32>
    %365 = arith.mulf %326, %364 : vector<4x1xf32>
    %366 = vector.extract_strided_slice %3 {offsets = [4, 0], sizes = [1, 22], strides = [1, 1]} : vector<10x22xf32> to vector<1x22xf32>
    %367 = vector.broadcast %365 : vector<4x1xf32> to vector<4x22xf32>
    %368 = vector.broadcast %366 : vector<1x22xf32> to vector<4x22xf32>
    %369 = arith.mulf %367, %368 : vector<4x22xf32>
    %370 = arith.addf %298, %369 : vector<4x22xf32>
    %371 = vector.extract_strided_slice %8 {offsets = [0, 20], sizes = [4, 4], strides = [1, 1]} : vector<4x40xf32> to vector<4x4xf32>
    %372 = vector.broadcast %324 : vector<4x1xf32> to vector<4x4xf32>
    %373 = arith.mulf %372, %2 : vector<4x4xf32>
    %374 = arith.addf %371, %373 : vector<4x4xf32>
    %375 = math.tanh %374 : vector<4x4xf32>
    %376 = vector.extract_strided_slice %375 {offsets = [0, 0], sizes = [4, 1], strides = [1, 1]} : vector<4x4xf32> to vector<4x1xf32>
    %cst_117 = arith.constant 1.000000e+00 : f32
    %377 = vector.broadcast %cst_117 : f32 to vector<4x1xf32>
    %378 = arith.addf %376, %377 : vector<4x1xf32>
    %cst_118 = arith.constant 5.000000e-01 : f32
    %379 = vector.broadcast %cst_118 : f32 to vector<4x1xf32>
    %380 = arith.mulf %379, %378 : vector<4x1xf32>
    %381 = vector.extract_strided_slice %375 {offsets = [0, 1], sizes = [4, 1], strides = [1, 1]} : vector<4x4xf32> to vector<4x1xf32>
    %cst_119 = arith.constant 1.000000e+00 : f32
    %382 = vector.broadcast %cst_119 : f32 to vector<4x1xf32>
    %383 = arith.addf %381, %382 : vector<4x1xf32>
    %cst_120 = arith.constant 5.000000e-01 : f32
    %384 = vector.broadcast %cst_120 : f32 to vector<4x1xf32>
    %385 = arith.mulf %384, %383 : vector<4x1xf32>
    %386 = vector.extract_strided_slice %375 {offsets = [0, 2], sizes = [4, 1], strides = [1, 1]} : vector<4x4xf32> to vector<4x1xf32>
    %387 = vector.extract_strided_slice %375 {offsets = [0, 3], sizes = [4, 1], strides = [1, 1]} : vector<4x4xf32> to vector<4x1xf32>
    %cst_121 = arith.constant 1.000000e+00 : f32
    %388 = vector.broadcast %cst_121 : f32 to vector<4x1xf32>
    %389 = arith.addf %387, %388 : vector<4x1xf32>
    %cst_122 = arith.constant 5.000000e-01 : f32
    %390 = vector.broadcast %cst_122 : f32 to vector<4x1xf32>
    %391 = arith.mulf %390, %389 : vector<4x1xf32>
    %392 = arith.mulf %385, %322 : vector<4x1xf32>
    %393 = arith.mulf %380, %386 : vector<4x1xf32>
    %394 = arith.addf %392, %393 : vector<4x1xf32>
    %395 = math.tanh %394 : vector<4x1xf32>
    %396 = arith.mulf %391, %395 : vector<4x1xf32>
    %cst_123 = arith.constant 5.000000e-01 : f32
    %397 = vector.broadcast %cst_123 : f32 to vector<4x1xf32>
    %398 = arith.mulf %397, %396 : vector<4x1xf32>
    %cst_124 = arith.constant 0.707106769 : f32
    %399 = vector.broadcast %cst_124 : f32 to vector<4x1xf32>
    %400 = arith.mulf %396, %399 : vector<4x1xf32>
    %cst_125 = arith.constant 0.000000e+00 : f32
    %401 = vector.broadcast %cst_125 : f32 to vector<4x1xf32>
    %402 = arith.cmpf oge, %400, %401 : vector<4x1xf32>
    %cst_126 = arith.constant 1.000000e+00 : f32
    %cst_127 = arith.constant -1.000000e+00 : f32
    %403 = vector.broadcast %cst_126 : f32 to vector<4x1xf32>
    %404 = vector.broadcast %cst_127 : f32 to vector<4x1xf32>
    %405 = arith.select %402, %403, %404 : vector<4x1xi1>, vector<4x1xf32>
    %406 = math.absf %400 : vector<4x1xf32>
    %cst_128 = arith.constant 0.327591091 : f32
    %407 = vector.broadcast %cst_128 : f32 to vector<4x1xf32>
    %408 = arith.mulf %407, %406 : vector<4x1xf32>
    %cst_129 = arith.constant 1.000000e+00 : f32
    %409 = vector.broadcast %cst_129 : f32 to vector<4x1xf32>
    %410 = arith.addf %409, %408 : vector<4x1xf32>
    %cst_130 = arith.constant 1.000000e+00 : f32
    %411 = vector.broadcast %cst_130 : f32 to vector<4x1xf32>
    %412 = arith.divf %411, %410 : vector<4x1xf32>
    %cst_131 = arith.constant 1.06140542 : f32
    %413 = vector.broadcast %cst_131 : f32 to vector<4x1xf32>
    %414 = arith.mulf %413, %412 : vector<4x1xf32>
    %cst_132 = arith.constant -1.45315206 : f32
    %415 = vector.broadcast %cst_132 : f32 to vector<4x1xf32>
    %416 = arith.addf %414, %415 : vector<4x1xf32>
    %417 = arith.mulf %416, %412 : vector<4x1xf32>
    %cst_133 = arith.constant 1.42141378 : f32
    %418 = vector.broadcast %cst_133 : f32 to vector<4x1xf32>
    %419 = arith.addf %417, %418 : vector<4x1xf32>
    %420 = arith.mulf %419, %412 : vector<4x1xf32>
    %cst_134 = arith.constant -0.284496725 : f32
    %421 = vector.broadcast %cst_134 : f32 to vector<4x1xf32>
    %422 = arith.addf %420, %421 : vector<4x1xf32>
    %423 = arith.mulf %422, %412 : vector<4x1xf32>
    %cst_135 = arith.constant 0.254829586 : f32
    %424 = vector.broadcast %cst_135 : f32 to vector<4x1xf32>
    %425 = arith.addf %423, %424 : vector<4x1xf32>
    %426 = arith.mulf %425, %412 : vector<4x1xf32>
    %cst_136 = arith.constant 0.000000e+00 : f32
    %427 = vector.broadcast %cst_136 : f32 to vector<4x1xf32>
    %428 = arith.subf %427, %406 : vector<4x1xf32>
    %429 = arith.mulf %428, %406 : vector<4x1xf32>
    %430 = math.exp %429 : vector<4x1xf32>
    %431 = arith.mulf %426, %430 : vector<4x1xf32>
    %cst_137 = arith.constant 1.000000e+00 : f32
    %432 = vector.broadcast %cst_137 : f32 to vector<4x1xf32>
    %433 = arith.subf %432, %431 : vector<4x1xf32>
    %434 = arith.mulf %405, %433 : vector<4x1xf32>
    %cst_138 = arith.constant 1.000000e+00 : f32
    %435 = vector.broadcast %cst_138 : f32 to vector<4x1xf32>
    %436 = arith.addf %435, %434 : vector<4x1xf32>
    %437 = arith.mulf %398, %436 : vector<4x1xf32>
    %438 = vector.extract_strided_slice %3 {offsets = [5, 0], sizes = [1, 22], strides = [1, 1]} : vector<10x22xf32> to vector<1x22xf32>
    %439 = vector.broadcast %437 : vector<4x1xf32> to vector<4x22xf32>
    %440 = vector.broadcast %438 : vector<1x22xf32> to vector<4x22xf32>
    %441 = arith.mulf %439, %440 : vector<4x22xf32>
    %442 = arith.addf %370, %441 : vector<4x22xf32>
    %443 = vector.extract_strided_slice %8 {offsets = [0, 24], sizes = [4, 4], strides = [1, 1]} : vector<4x40xf32> to vector<4x4xf32>
    %444 = vector.broadcast %396 : vector<4x1xf32> to vector<4x4xf32>
    %445 = arith.mulf %444, %2 : vector<4x4xf32>
    %446 = arith.addf %443, %445 : vector<4x4xf32>
    %447 = math.tanh %446 : vector<4x4xf32>
    %448 = vector.extract_strided_slice %447 {offsets = [0, 0], sizes = [4, 1], strides = [1, 1]} : vector<4x4xf32> to vector<4x1xf32>
    %cst_139 = arith.constant 1.000000e+00 : f32
    %449 = vector.broadcast %cst_139 : f32 to vector<4x1xf32>
    %450 = arith.addf %448, %449 : vector<4x1xf32>
    %cst_140 = arith.constant 5.000000e-01 : f32
    %451 = vector.broadcast %cst_140 : f32 to vector<4x1xf32>
    %452 = arith.mulf %451, %450 : vector<4x1xf32>
    %453 = vector.extract_strided_slice %447 {offsets = [0, 1], sizes = [4, 1], strides = [1, 1]} : vector<4x4xf32> to vector<4x1xf32>
    %cst_141 = arith.constant 1.000000e+00 : f32
    %454 = vector.broadcast %cst_141 : f32 to vector<4x1xf32>
    %455 = arith.addf %453, %454 : vector<4x1xf32>
    %cst_142 = arith.constant 5.000000e-01 : f32
    %456 = vector.broadcast %cst_142 : f32 to vector<4x1xf32>
    %457 = arith.mulf %456, %455 : vector<4x1xf32>
    %458 = vector.extract_strided_slice %447 {offsets = [0, 2], sizes = [4, 1], strides = [1, 1]} : vector<4x4xf32> to vector<4x1xf32>
    %459 = vector.extract_strided_slice %447 {offsets = [0, 3], sizes = [4, 1], strides = [1, 1]} : vector<4x4xf32> to vector<4x1xf32>
    %cst_143 = arith.constant 1.000000e+00 : f32
    %460 = vector.broadcast %cst_143 : f32 to vector<4x1xf32>
    %461 = arith.addf %459, %460 : vector<4x1xf32>
    %cst_144 = arith.constant 5.000000e-01 : f32
    %462 = vector.broadcast %cst_144 : f32 to vector<4x1xf32>
    %463 = arith.mulf %462, %461 : vector<4x1xf32>
    %464 = arith.mulf %457, %394 : vector<4x1xf32>
    %465 = arith.mulf %452, %458 : vector<4x1xf32>
    %466 = arith.addf %464, %465 : vector<4x1xf32>
    %467 = math.tanh %466 : vector<4x1xf32>
    %468 = arith.mulf %463, %467 : vector<4x1xf32>
    %cst_145 = arith.constant 5.000000e-01 : f32
    %469 = vector.broadcast %cst_145 : f32 to vector<4x1xf32>
    %470 = arith.mulf %469, %468 : vector<4x1xf32>
    %cst_146 = arith.constant 0.707106769 : f32
    %471 = vector.broadcast %cst_146 : f32 to vector<4x1xf32>
    %472 = arith.mulf %468, %471 : vector<4x1xf32>
    %cst_147 = arith.constant 0.000000e+00 : f32
    %473 = vector.broadcast %cst_147 : f32 to vector<4x1xf32>
    %474 = arith.cmpf oge, %472, %473 : vector<4x1xf32>
    %cst_148 = arith.constant 1.000000e+00 : f32
    %cst_149 = arith.constant -1.000000e+00 : f32
    %475 = vector.broadcast %cst_148 : f32 to vector<4x1xf32>
    %476 = vector.broadcast %cst_149 : f32 to vector<4x1xf32>
    %477 = arith.select %474, %475, %476 : vector<4x1xi1>, vector<4x1xf32>
    %478 = math.absf %472 : vector<4x1xf32>
    %cst_150 = arith.constant 0.327591091 : f32
    %479 = vector.broadcast %cst_150 : f32 to vector<4x1xf32>
    %480 = arith.mulf %479, %478 : vector<4x1xf32>
    %cst_151 = arith.constant 1.000000e+00 : f32
    %481 = vector.broadcast %cst_151 : f32 to vector<4x1xf32>
    %482 = arith.addf %481, %480 : vector<4x1xf32>
    %cst_152 = arith.constant 1.000000e+00 : f32
    %483 = vector.broadcast %cst_152 : f32 to vector<4x1xf32>
    %484 = arith.divf %483, %482 : vector<4x1xf32>
    %cst_153 = arith.constant 1.06140542 : f32
    %485 = vector.broadcast %cst_153 : f32 to vector<4x1xf32>
    %486 = arith.mulf %485, %484 : vector<4x1xf32>
    %cst_154 = arith.constant -1.45315206 : f32
    %487 = vector.broadcast %cst_154 : f32 to vector<4x1xf32>
    %488 = arith.addf %486, %487 : vector<4x1xf32>
    %489 = arith.mulf %488, %484 : vector<4x1xf32>
    %cst_155 = arith.constant 1.42141378 : f32
    %490 = vector.broadcast %cst_155 : f32 to vector<4x1xf32>
    %491 = arith.addf %489, %490 : vector<4x1xf32>
    %492 = arith.mulf %491, %484 : vector<4x1xf32>
    %cst_156 = arith.constant -0.284496725 : f32
    %493 = vector.broadcast %cst_156 : f32 to vector<4x1xf32>
    %494 = arith.addf %492, %493 : vector<4x1xf32>
    %495 = arith.mulf %494, %484 : vector<4x1xf32>
    %cst_157 = arith.constant 0.254829586 : f32
    %496 = vector.broadcast %cst_157 : f32 to vector<4x1xf32>
    %497 = arith.addf %495, %496 : vector<4x1xf32>
    %498 = arith.mulf %497, %484 : vector<4x1xf32>
    %cst_158 = arith.constant 0.000000e+00 : f32
    %499 = vector.broadcast %cst_158 : f32 to vector<4x1xf32>
    %500 = arith.subf %499, %478 : vector<4x1xf32>
    %501 = arith.mulf %500, %478 : vector<4x1xf32>
    %502 = math.exp %501 : vector<4x1xf32>
    %503 = arith.mulf %498, %502 : vector<4x1xf32>
    %cst_159 = arith.constant 1.000000e+00 : f32
    %504 = vector.broadcast %cst_159 : f32 to vector<4x1xf32>
    %505 = arith.subf %504, %503 : vector<4x1xf32>
    %506 = arith.mulf %477, %505 : vector<4x1xf32>
    %cst_160 = arith.constant 1.000000e+00 : f32
    %507 = vector.broadcast %cst_160 : f32 to vector<4x1xf32>
    %508 = arith.addf %507, %506 : vector<4x1xf32>
    %509 = arith.mulf %470, %508 : vector<4x1xf32>
    %510 = vector.extract_strided_slice %3 {offsets = [6, 0], sizes = [1, 22], strides = [1, 1]} : vector<10x22xf32> to vector<1x22xf32>
    %511 = vector.broadcast %509 : vector<4x1xf32> to vector<4x22xf32>
    %512 = vector.broadcast %510 : vector<1x22xf32> to vector<4x22xf32>
    %513 = arith.mulf %511, %512 : vector<4x22xf32>
    %514 = arith.addf %442, %513 : vector<4x22xf32>
    %515 = vector.extract_strided_slice %8 {offsets = [0, 28], sizes = [4, 4], strides = [1, 1]} : vector<4x40xf32> to vector<4x4xf32>
    %516 = vector.broadcast %468 : vector<4x1xf32> to vector<4x4xf32>
    %517 = arith.mulf %516, %2 : vector<4x4xf32>
    %518 = arith.addf %515, %517 : vector<4x4xf32>
    %519 = math.tanh %518 : vector<4x4xf32>
    %520 = vector.extract_strided_slice %519 {offsets = [0, 0], sizes = [4, 1], strides = [1, 1]} : vector<4x4xf32> to vector<4x1xf32>
    %cst_161 = arith.constant 1.000000e+00 : f32
    %521 = vector.broadcast %cst_161 : f32 to vector<4x1xf32>
    %522 = arith.addf %520, %521 : vector<4x1xf32>
    %cst_162 = arith.constant 5.000000e-01 : f32
    %523 = vector.broadcast %cst_162 : f32 to vector<4x1xf32>
    %524 = arith.mulf %523, %522 : vector<4x1xf32>
    %525 = vector.extract_strided_slice %519 {offsets = [0, 1], sizes = [4, 1], strides = [1, 1]} : vector<4x4xf32> to vector<4x1xf32>
    %cst_163 = arith.constant 1.000000e+00 : f32
    %526 = vector.broadcast %cst_163 : f32 to vector<4x1xf32>
    %527 = arith.addf %525, %526 : vector<4x1xf32>
    %cst_164 = arith.constant 5.000000e-01 : f32
    %528 = vector.broadcast %cst_164 : f32 to vector<4x1xf32>
    %529 = arith.mulf %528, %527 : vector<4x1xf32>
    %530 = vector.extract_strided_slice %519 {offsets = [0, 2], sizes = [4, 1], strides = [1, 1]} : vector<4x4xf32> to vector<4x1xf32>
    %531 = vector.extract_strided_slice %519 {offsets = [0, 3], sizes = [4, 1], strides = [1, 1]} : vector<4x4xf32> to vector<4x1xf32>
    %cst_165 = arith.constant 1.000000e+00 : f32
    %532 = vector.broadcast %cst_165 : f32 to vector<4x1xf32>
    %533 = arith.addf %531, %532 : vector<4x1xf32>
    %cst_166 = arith.constant 5.000000e-01 : f32
    %534 = vector.broadcast %cst_166 : f32 to vector<4x1xf32>
    %535 = arith.mulf %534, %533 : vector<4x1xf32>
    %536 = arith.mulf %529, %466 : vector<4x1xf32>
    %537 = arith.mulf %524, %530 : vector<4x1xf32>
    %538 = arith.addf %536, %537 : vector<4x1xf32>
    %539 = math.tanh %538 : vector<4x1xf32>
    %540 = arith.mulf %535, %539 : vector<4x1xf32>
    %cst_167 = arith.constant 5.000000e-01 : f32
    %541 = vector.broadcast %cst_167 : f32 to vector<4x1xf32>
    %542 = arith.mulf %541, %540 : vector<4x1xf32>
    %cst_168 = arith.constant 0.707106769 : f32
    %543 = vector.broadcast %cst_168 : f32 to vector<4x1xf32>
    %544 = arith.mulf %540, %543 : vector<4x1xf32>
    %cst_169 = arith.constant 0.000000e+00 : f32
    %545 = vector.broadcast %cst_169 : f32 to vector<4x1xf32>
    %546 = arith.cmpf oge, %544, %545 : vector<4x1xf32>
    %cst_170 = arith.constant 1.000000e+00 : f32
    %cst_171 = arith.constant -1.000000e+00 : f32
    %547 = vector.broadcast %cst_170 : f32 to vector<4x1xf32>
    %548 = vector.broadcast %cst_171 : f32 to vector<4x1xf32>
    %549 = arith.select %546, %547, %548 : vector<4x1xi1>, vector<4x1xf32>
    %550 = math.absf %544 : vector<4x1xf32>
    %cst_172 = arith.constant 0.327591091 : f32
    %551 = vector.broadcast %cst_172 : f32 to vector<4x1xf32>
    %552 = arith.mulf %551, %550 : vector<4x1xf32>
    %cst_173 = arith.constant 1.000000e+00 : f32
    %553 = vector.broadcast %cst_173 : f32 to vector<4x1xf32>
    %554 = arith.addf %553, %552 : vector<4x1xf32>
    %cst_174 = arith.constant 1.000000e+00 : f32
    %555 = vector.broadcast %cst_174 : f32 to vector<4x1xf32>
    %556 = arith.divf %555, %554 : vector<4x1xf32>
    %cst_175 = arith.constant 1.06140542 : f32
    %557 = vector.broadcast %cst_175 : f32 to vector<4x1xf32>
    %558 = arith.mulf %557, %556 : vector<4x1xf32>
    %cst_176 = arith.constant -1.45315206 : f32
    %559 = vector.broadcast %cst_176 : f32 to vector<4x1xf32>
    %560 = arith.addf %558, %559 : vector<4x1xf32>
    %561 = arith.mulf %560, %556 : vector<4x1xf32>
    %cst_177 = arith.constant 1.42141378 : f32
    %562 = vector.broadcast %cst_177 : f32 to vector<4x1xf32>
    %563 = arith.addf %561, %562 : vector<4x1xf32>
    %564 = arith.mulf %563, %556 : vector<4x1xf32>
    %cst_178 = arith.constant -0.284496725 : f32
    %565 = vector.broadcast %cst_178 : f32 to vector<4x1xf32>
    %566 = arith.addf %564, %565 : vector<4x1xf32>
    %567 = arith.mulf %566, %556 : vector<4x1xf32>
    %cst_179 = arith.constant 0.254829586 : f32
    %568 = vector.broadcast %cst_179 : f32 to vector<4x1xf32>
    %569 = arith.addf %567, %568 : vector<4x1xf32>
    %570 = arith.mulf %569, %556 : vector<4x1xf32>
    %cst_180 = arith.constant 0.000000e+00 : f32
    %571 = vector.broadcast %cst_180 : f32 to vector<4x1xf32>
    %572 = arith.subf %571, %550 : vector<4x1xf32>
    %573 = arith.mulf %572, %550 : vector<4x1xf32>
    %574 = math.exp %573 : vector<4x1xf32>
    %575 = arith.mulf %570, %574 : vector<4x1xf32>
    %cst_181 = arith.constant 1.000000e+00 : f32
    %576 = vector.broadcast %cst_181 : f32 to vector<4x1xf32>
    %577 = arith.subf %576, %575 : vector<4x1xf32>
    %578 = arith.mulf %549, %577 : vector<4x1xf32>
    %cst_182 = arith.constant 1.000000e+00 : f32
    %579 = vector.broadcast %cst_182 : f32 to vector<4x1xf32>
    %580 = arith.addf %579, %578 : vector<4x1xf32>
    %581 = arith.mulf %542, %580 : vector<4x1xf32>
    %582 = vector.extract_strided_slice %3 {offsets = [7, 0], sizes = [1, 22], strides = [1, 1]} : vector<10x22xf32> to vector<1x22xf32>
    %583 = vector.broadcast %581 : vector<4x1xf32> to vector<4x22xf32>
    %584 = vector.broadcast %582 : vector<1x22xf32> to vector<4x22xf32>
    %585 = arith.mulf %583, %584 : vector<4x22xf32>
    %586 = arith.addf %514, %585 : vector<4x22xf32>
    %587 = vector.extract_strided_slice %8 {offsets = [0, 32], sizes = [4, 4], strides = [1, 1]} : vector<4x40xf32> to vector<4x4xf32>
    %588 = vector.broadcast %540 : vector<4x1xf32> to vector<4x4xf32>
    %589 = arith.mulf %588, %2 : vector<4x4xf32>
    %590 = arith.addf %587, %589 : vector<4x4xf32>
    %591 = math.tanh %590 : vector<4x4xf32>
    %592 = vector.extract_strided_slice %591 {offsets = [0, 0], sizes = [4, 1], strides = [1, 1]} : vector<4x4xf32> to vector<4x1xf32>
    %cst_183 = arith.constant 1.000000e+00 : f32
    %593 = vector.broadcast %cst_183 : f32 to vector<4x1xf32>
    %594 = arith.addf %592, %593 : vector<4x1xf32>
    %cst_184 = arith.constant 5.000000e-01 : f32
    %595 = vector.broadcast %cst_184 : f32 to vector<4x1xf32>
    %596 = arith.mulf %595, %594 : vector<4x1xf32>
    %597 = vector.extract_strided_slice %591 {offsets = [0, 1], sizes = [4, 1], strides = [1, 1]} : vector<4x4xf32> to vector<4x1xf32>
    %cst_185 = arith.constant 1.000000e+00 : f32
    %598 = vector.broadcast %cst_185 : f32 to vector<4x1xf32>
    %599 = arith.addf %597, %598 : vector<4x1xf32>
    %cst_186 = arith.constant 5.000000e-01 : f32
    %600 = vector.broadcast %cst_186 : f32 to vector<4x1xf32>
    %601 = arith.mulf %600, %599 : vector<4x1xf32>
    %602 = vector.extract_strided_slice %591 {offsets = [0, 2], sizes = [4, 1], strides = [1, 1]} : vector<4x4xf32> to vector<4x1xf32>
    %603 = vector.extract_strided_slice %591 {offsets = [0, 3], sizes = [4, 1], strides = [1, 1]} : vector<4x4xf32> to vector<4x1xf32>
    %cst_187 = arith.constant 1.000000e+00 : f32
    %604 = vector.broadcast %cst_187 : f32 to vector<4x1xf32>
    %605 = arith.addf %603, %604 : vector<4x1xf32>
    %cst_188 = arith.constant 5.000000e-01 : f32
    %606 = vector.broadcast %cst_188 : f32 to vector<4x1xf32>
    %607 = arith.mulf %606, %605 : vector<4x1xf32>
    %608 = arith.mulf %601, %538 : vector<4x1xf32>
    %609 = arith.mulf %596, %602 : vector<4x1xf32>
    %610 = arith.addf %608, %609 : vector<4x1xf32>
    %611 = math.tanh %610 : vector<4x1xf32>
    %612 = arith.mulf %607, %611 : vector<4x1xf32>
    %cst_189 = arith.constant 5.000000e-01 : f32
    %613 = vector.broadcast %cst_189 : f32 to vector<4x1xf32>
    %614 = arith.mulf %613, %612 : vector<4x1xf32>
    %cst_190 = arith.constant 0.707106769 : f32
    %615 = vector.broadcast %cst_190 : f32 to vector<4x1xf32>
    %616 = arith.mulf %612, %615 : vector<4x1xf32>
    %cst_191 = arith.constant 0.000000e+00 : f32
    %617 = vector.broadcast %cst_191 : f32 to vector<4x1xf32>
    %618 = arith.cmpf oge, %616, %617 : vector<4x1xf32>
    %cst_192 = arith.constant 1.000000e+00 : f32
    %cst_193 = arith.constant -1.000000e+00 : f32
    %619 = vector.broadcast %cst_192 : f32 to vector<4x1xf32>
    %620 = vector.broadcast %cst_193 : f32 to vector<4x1xf32>
    %621 = arith.select %618, %619, %620 : vector<4x1xi1>, vector<4x1xf32>
    %622 = math.absf %616 : vector<4x1xf32>
    %cst_194 = arith.constant 0.327591091 : f32
    %623 = vector.broadcast %cst_194 : f32 to vector<4x1xf32>
    %624 = arith.mulf %623, %622 : vector<4x1xf32>
    %cst_195 = arith.constant 1.000000e+00 : f32
    %625 = vector.broadcast %cst_195 : f32 to vector<4x1xf32>
    %626 = arith.addf %625, %624 : vector<4x1xf32>
    %cst_196 = arith.constant 1.000000e+00 : f32
    %627 = vector.broadcast %cst_196 : f32 to vector<4x1xf32>
    %628 = arith.divf %627, %626 : vector<4x1xf32>
    %cst_197 = arith.constant 1.06140542 : f32
    %629 = vector.broadcast %cst_197 : f32 to vector<4x1xf32>
    %630 = arith.mulf %629, %628 : vector<4x1xf32>
    %cst_198 = arith.constant -1.45315206 : f32
    %631 = vector.broadcast %cst_198 : f32 to vector<4x1xf32>
    %632 = arith.addf %630, %631 : vector<4x1xf32>
    %633 = arith.mulf %632, %628 : vector<4x1xf32>
    %cst_199 = arith.constant 1.42141378 : f32
    %634 = vector.broadcast %cst_199 : f32 to vector<4x1xf32>
    %635 = arith.addf %633, %634 : vector<4x1xf32>
    %636 = arith.mulf %635, %628 : vector<4x1xf32>
    %cst_200 = arith.constant -0.284496725 : f32
    %637 = vector.broadcast %cst_200 : f32 to vector<4x1xf32>
    %638 = arith.addf %636, %637 : vector<4x1xf32>
    %639 = arith.mulf %638, %628 : vector<4x1xf32>
    %cst_201 = arith.constant 0.254829586 : f32
    %640 = vector.broadcast %cst_201 : f32 to vector<4x1xf32>
    %641 = arith.addf %639, %640 : vector<4x1xf32>
    %642 = arith.mulf %641, %628 : vector<4x1xf32>
    %cst_202 = arith.constant 0.000000e+00 : f32
    %643 = vector.broadcast %cst_202 : f32 to vector<4x1xf32>
    %644 = arith.subf %643, %622 : vector<4x1xf32>
    %645 = arith.mulf %644, %622 : vector<4x1xf32>
    %646 = math.exp %645 : vector<4x1xf32>
    %647 = arith.mulf %642, %646 : vector<4x1xf32>
    %cst_203 = arith.constant 1.000000e+00 : f32
    %648 = vector.broadcast %cst_203 : f32 to vector<4x1xf32>
    %649 = arith.subf %648, %647 : vector<4x1xf32>
    %650 = arith.mulf %621, %649 : vector<4x1xf32>
    %cst_204 = arith.constant 1.000000e+00 : f32
    %651 = vector.broadcast %cst_204 : f32 to vector<4x1xf32>
    %652 = arith.addf %651, %650 : vector<4x1xf32>
    %653 = arith.mulf %614, %652 : vector<4x1xf32>
    %654 = vector.extract_strided_slice %3 {offsets = [8, 0], sizes = [1, 22], strides = [1, 1]} : vector<10x22xf32> to vector<1x22xf32>
    %655 = vector.broadcast %653 : vector<4x1xf32> to vector<4x22xf32>
    %656 = vector.broadcast %654 : vector<1x22xf32> to vector<4x22xf32>
    %657 = arith.mulf %655, %656 : vector<4x22xf32>
    %658 = arith.addf %586, %657 : vector<4x22xf32>
    %659 = vector.extract_strided_slice %8 {offsets = [0, 36], sizes = [4, 4], strides = [1, 1]} : vector<4x40xf32> to vector<4x4xf32>
    %660 = vector.broadcast %612 : vector<4x1xf32> to vector<4x4xf32>
    %661 = arith.mulf %660, %2 : vector<4x4xf32>
    %662 = arith.addf %659, %661 : vector<4x4xf32>
    %663 = math.tanh %662 : vector<4x4xf32>
    %664 = vector.extract_strided_slice %663 {offsets = [0, 0], sizes = [4, 1], strides = [1, 1]} : vector<4x4xf32> to vector<4x1xf32>
    %cst_205 = arith.constant 1.000000e+00 : f32
    %665 = vector.broadcast %cst_205 : f32 to vector<4x1xf32>
    %666 = arith.addf %664, %665 : vector<4x1xf32>
    %cst_206 = arith.constant 5.000000e-01 : f32
    %667 = vector.broadcast %cst_206 : f32 to vector<4x1xf32>
    %668 = arith.mulf %667, %666 : vector<4x1xf32>
    %669 = vector.extract_strided_slice %663 {offsets = [0, 1], sizes = [4, 1], strides = [1, 1]} : vector<4x4xf32> to vector<4x1xf32>
    %cst_207 = arith.constant 1.000000e+00 : f32
    %670 = vector.broadcast %cst_207 : f32 to vector<4x1xf32>
    %671 = arith.addf %669, %670 : vector<4x1xf32>
    %cst_208 = arith.constant 5.000000e-01 : f32
    %672 = vector.broadcast %cst_208 : f32 to vector<4x1xf32>
    %673 = arith.mulf %672, %671 : vector<4x1xf32>
    %674 = vector.extract_strided_slice %663 {offsets = [0, 2], sizes = [4, 1], strides = [1, 1]} : vector<4x4xf32> to vector<4x1xf32>
    %675 = vector.extract_strided_slice %663 {offsets = [0, 3], sizes = [4, 1], strides = [1, 1]} : vector<4x4xf32> to vector<4x1xf32>
    %cst_209 = arith.constant 1.000000e+00 : f32
    %676 = vector.broadcast %cst_209 : f32 to vector<4x1xf32>
    %677 = arith.addf %675, %676 : vector<4x1xf32>
    %cst_210 = arith.constant 5.000000e-01 : f32
    %678 = vector.broadcast %cst_210 : f32 to vector<4x1xf32>
    %679 = arith.mulf %678, %677 : vector<4x1xf32>
    %680 = arith.mulf %673, %610 : vector<4x1xf32>
    %681 = arith.mulf %668, %674 : vector<4x1xf32>
    %682 = arith.addf %680, %681 : vector<4x1xf32>
    %683 = math.tanh %682 : vector<4x1xf32>
    %684 = arith.mulf %679, %683 : vector<4x1xf32>
    %cst_211 = arith.constant 5.000000e-01 : f32
    %685 = vector.broadcast %cst_211 : f32 to vector<4x1xf32>
    %686 = arith.mulf %685, %684 : vector<4x1xf32>
    %cst_212 = arith.constant 0.707106769 : f32
    %687 = vector.broadcast %cst_212 : f32 to vector<4x1xf32>
    %688 = arith.mulf %684, %687 : vector<4x1xf32>
    %cst_213 = arith.constant 0.000000e+00 : f32
    %689 = vector.broadcast %cst_213 : f32 to vector<4x1xf32>
    %690 = arith.cmpf oge, %688, %689 : vector<4x1xf32>
    %cst_214 = arith.constant 1.000000e+00 : f32
    %cst_215 = arith.constant -1.000000e+00 : f32
    %691 = vector.broadcast %cst_214 : f32 to vector<4x1xf32>
    %692 = vector.broadcast %cst_215 : f32 to vector<4x1xf32>
    %693 = arith.select %690, %691, %692 : vector<4x1xi1>, vector<4x1xf32>
    %694 = math.absf %688 : vector<4x1xf32>
    %cst_216 = arith.constant 0.327591091 : f32
    %695 = vector.broadcast %cst_216 : f32 to vector<4x1xf32>
    %696 = arith.mulf %695, %694 : vector<4x1xf32>
    %cst_217 = arith.constant 1.000000e+00 : f32
    %697 = vector.broadcast %cst_217 : f32 to vector<4x1xf32>
    %698 = arith.addf %697, %696 : vector<4x1xf32>
    %cst_218 = arith.constant 1.000000e+00 : f32
    %699 = vector.broadcast %cst_218 : f32 to vector<4x1xf32>
    %700 = arith.divf %699, %698 : vector<4x1xf32>
    %cst_219 = arith.constant 1.06140542 : f32
    %701 = vector.broadcast %cst_219 : f32 to vector<4x1xf32>
    %702 = arith.mulf %701, %700 : vector<4x1xf32>
    %cst_220 = arith.constant -1.45315206 : f32
    %703 = vector.broadcast %cst_220 : f32 to vector<4x1xf32>
    %704 = arith.addf %702, %703 : vector<4x1xf32>
    %705 = arith.mulf %704, %700 : vector<4x1xf32>
    %cst_221 = arith.constant 1.42141378 : f32
    %706 = vector.broadcast %cst_221 : f32 to vector<4x1xf32>
    %707 = arith.addf %705, %706 : vector<4x1xf32>
    %708 = arith.mulf %707, %700 : vector<4x1xf32>
    %cst_222 = arith.constant -0.284496725 : f32
    %709 = vector.broadcast %cst_222 : f32 to vector<4x1xf32>
    %710 = arith.addf %708, %709 : vector<4x1xf32>
    %711 = arith.mulf %710, %700 : vector<4x1xf32>
    %cst_223 = arith.constant 0.254829586 : f32
    %712 = vector.broadcast %cst_223 : f32 to vector<4x1xf32>
    %713 = arith.addf %711, %712 : vector<4x1xf32>
    %714 = arith.mulf %713, %700 : vector<4x1xf32>
    %cst_224 = arith.constant 0.000000e+00 : f32
    %715 = vector.broadcast %cst_224 : f32 to vector<4x1xf32>
    %716 = arith.subf %715, %694 : vector<4x1xf32>
    %717 = arith.mulf %716, %694 : vector<4x1xf32>
    %718 = math.exp %717 : vector<4x1xf32>
    %719 = arith.mulf %714, %718 : vector<4x1xf32>
    %cst_225 = arith.constant 1.000000e+00 : f32
    %720 = vector.broadcast %cst_225 : f32 to vector<4x1xf32>
    %721 = arith.subf %720, %719 : vector<4x1xf32>
    %722 = arith.mulf %693, %721 : vector<4x1xf32>
    %cst_226 = arith.constant 1.000000e+00 : f32
    %723 = vector.broadcast %cst_226 : f32 to vector<4x1xf32>
    %724 = arith.addf %723, %722 : vector<4x1xf32>
    %725 = arith.mulf %686, %724 : vector<4x1xf32>
    %726 = vector.extract_strided_slice %3 {offsets = [9, 0], sizes = [1, 22], strides = [1, 1]} : vector<10x22xf32> to vector<1x22xf32>
    %727 = vector.broadcast %725 : vector<4x1xf32> to vector<4x22xf32>
    %728 = vector.broadcast %726 : vector<1x22xf32> to vector<4x22xf32>
    %729 = arith.mulf %727, %728 : vector<4x22xf32>
    %730 = arith.addf %658, %729 : vector<4x22xf32>
    %cst_227 = arith.constant 0.000000e+00 : f32
    %731 = vector.broadcast %cst_227 : f32 to vector<4x22xf32>
    %732 = arith.maximumf %730, %731 : vector<4x22xf32>
    %c0_228 = arith.constant 0 : index
    %c0_229 = arith.constant 0 : index
    %733 = vector.load %arg3[%c0_228, %c0_229] : memref<4x22xf32, #tpu.memory_space<vmem>>, vector<4x22xf32>
    tpu.vector_store %arg3[%c0_228, %c0_229], %732 {strides = array<i32>} : memref<4x22xf32, #tpu.memory_space<vmem>>, vector<4x22xf32>,
    return
  }
}

</mosaic_0001>

<bundles_post_ra>
// kernel: tile.39
= control target key start
LH: loop header
LB: loop body
LE: loop exit
PB: predicated region body
PF: predicated region fallthrough
CT: control target
= control target key end

     0   :  { %s28_s0 = inlined_call_operand.vmem [shape: f32[4], index: 0, kind: input, shape index: {}]   ;;  %s29_s1 = inlined_call_operand.vmem [shape: f32[10,4], index: 1, kind: output, shape index: {}]  }
   0x1   :  { %v4_v0 = vld [vmem:[%s28_s0] ss:$0 sm:$0xff] }
   0x2   :  { %5 = vst [vmem:[%s29_s1] sm:$0xff] %v4_v0  ;;  %8 = vst [vmem:[%s29_s1 + $0x8] sm:$0xff] %v4_v0 }

// kernel: mul.17
= control target key start
LH: loop header
LB: loop body
LE: loop exit
PB: predicated region body
PF: predicated region fallthrough
CT: control target
= control target key end

     0   :  { %s83_s10 = smov 36   ;;  %s84_s11 = smov 28   ;;  %vm3_vm0 = vcmask 31744   ;;  %vm9_vm1 = vcmask 326944   ;;  %vm15_vm2 = vcmask 294144   ;;  %vm21_vm3 = vcmask 261344   ;;  %s135_s0 = inlined_call_operand.vmem [shape: f32[10,4], index: 0, kind: input, shape index: {}]   ;;  %s136_s1 = inlined_call_operand.vmem [shape: f32[40], index: 1, kind: output, shape index: {}]  }
   0x1   :  { %v65_v0 = vld [vmem:[%s135_s0 + $0x9] sm:$0x1]   ;;  %v67_v1 = vld [vmem:[%s135_s0 + $0x7] sm:$0x1]   ;;  %v66_v2 = vld [vmem:[%s135_s0 + $0x8] sm:$0x1]  }
   0x2   :  { %7 = vrot.lane.b32.xlu0 %v65_v0, %s83_s10  ;;  %19 = vrot.lane.b32.xlu1 %v67_v1, %s84_s11  ;;  %v68_v3 = vld [vmem:[%s135_s0 + $0x6] sm:$0x1]   ;;  %v2_v4 = vld [vmem:[%s135_s0] sm:$0x1]   ;;  %s85_s18 = smov 32   ;;  %s86_s19 = smov 24  }
   0x3   :  { %v69_v5 = vld [vmem:[%s135_s0 + $0x5] sm:$0x1]   ;;  %v70_v6 = vld [vmem:[%s135_s0 + $0x4] sm:$0x1]   ;;  %4 = vst.msk [vmem:[#allocation0] sm:$0x1] %vm3_vm0, %v2_v4  }
   0x4   :  { %s87_s24 = smov 20   ;;  %s88_s25 = smov 16   ;;  %v71_v7 = vld [vmem:[%s135_s0 + $0x3] sm:$0x1]   ;;  %v72_v8 = vld [vmem:[%s135_s0 + $0x2] sm:$0x1]  }
   0x5   :  { %s89_s30 = smov 12   ;;  %s90_s2 = smov 8   ;;  %v73_v9 = vld [vmem:[%s135_s0 + $0x1] sm:$0x1]   ;;  %vm27_vm4 = vcmask 228544   ;;  %vm33_vm5 = vcmask 195744  }
   0x6   :  { %13 = vrot.lane.b32.xlu0 %v66_v2, %s85_s18  ;;  %25 = vrot.lane.b32.xlu1 %v68_v3, %s86_s19  ;;  %s91_s0 = smov 4   ;;  %vm39_vm6 = vcmask 162944   ;;  %vm45_vm7 = vcmask 130144   ;;  %vm51_vm8 = vcmask 97344   ;;  %vm57_vm9 = vcmask 64544  }
   0xa   :  { %31 = vrot.lane.b32.xlu0 %v69_v5, %s87_s24  ;;  %37 = vrot.lane.b32.xlu1 %v70_v6, %s88_s25 }
   0xe   :  { %43 = vrot.lane.b32.xlu0 %v71_v7, %s89_s30  ;;  %49 = vrot.lane.b32.xlu1 %v72_v8, %s90_s2 }
  0x12   :  { %55 = vrot.lane.b32.xlu0 %v73_v9, %s91_s0 }
  0x74   :  { %v8_v10 = vpop.permute.xlu0 %7   ;;  %v20_v11 = vpop.permute.xlu1 %19  }
  0x75   :  { %10 = vst.msk [vmem:[#allocation0] sm:$0x1] %vm9_vm1, %v8_v10  }
  0x78   :  { %v14_v12 = vpop.permute.xlu0 %13   ;;  %v26_v13 = vpop.permute.xlu1 %25  }
  0x79   :  { %16 = vst.msk [vmem:[#allocation0] sm:$0x1] %vm15_vm2, %v14_v12  }
  0x7a   :  { %22 = vst.msk [vmem:[#allocation0] sm:$0x1] %vm21_vm3, %v20_v11  }
  0x7b   :  { %28 = vst.msk [vmem:[#allocation0] sm:$0x1] %vm27_vm4, %v26_v13  }
  0x7c   :  { %v32_v14 = vpop.permute.xlu0 %31   ;;  %v38_v15 = vpop.permute.xlu1 %37  }
  0x7d   :  { %34 = vst.msk [vmem:[#allocation0] sm:$0x1] %vm33_vm5, %v32_v14  }
  0x7e   :  { %40 = vst.msk [vmem:[#allocation0] sm:$0x1] %vm39_vm6, %v38_v15  }
  0x80   :  { %v44_v16 = vpop.permute.xlu0 %43   ;;  %v50_v17 = vpop.permute.xlu1 %49  }
  0x81   :  { %46 = vst.msk [vmem:[#allocation0] sm:$0x1] %vm45_vm7, %v44_v16  }
  0x82   :  { %52 = vst.msk [vmem:[#allocation0] sm:$0x1] %vm51_vm8, %v50_v17  }
  0x84   :  { %v56_v18 = vpop.permute.xlu0 %55  }
  0x85   :  { %58 = vst.msk [vmem:[#allocation0] sm:$0x1] %vm57_vm9, %v56_v18  }
  0x8c   :  { %v62_v19 = vld [vmem:[#allocation0] sm:$0x1] }
  0x8d   :  { %64 = vst [vmem:[%s136_s1] sm:$0x1] %v62_v19 }

// kernel: gcn_net_forward.1
= control target key start
LH: loop header
LB: loop body
LE: loop exit
PB: predicated region body
PF: predicated region fallthrough
CT: control target
= control target key end

     0   :  { %v1206_v3 = vmov 0.0|0.0   ;;  %vm1207_vm0 = vmmov 0   ;;  %v1208_v4 = vmov 0.0   ;;  %s1210_s7 = smov 1   ;;  %s1212_s8 = smov 2   ;;  %vm930_vm11 = vcmask 175104   ;;  %s1658_s1 = inlined_call_operand.vmem [shape: f32[384,40], index: 1, kind: input, shape index: {}]   ;;  %s1659_s0 = inlined_call_operand.vmem [shape: f32[4,384], index: 0, kind: input, shape index: {}]   ;;  %s1660_s2 = inlined_call_operand.vmem [shape: f32[40,128], index: 2, kind: input, shape index: {}]   ;;  %s1661_s3 = inlined_call_operand.vmem [shape: f32[4,22], index: 3, kind: output, shape index: {}]  }
   0x1   :  { %v37_v0 = vld [vmem:[%s1658_s1 + $0x80] sm:$0xff]  ;;  %v38_v1 = vld [vmem:[%s1658_s1 + $0x88] sm:$0xff]  ;;  %1055 = vmatprep.subr.bf16.mxu1 %v1206_v3  ;;  %1020 = vmatprep.mubr.msk.f32.mxu1 %vm1207_vm0, %v1208_v4  ;;  %v39_v7 = vld [vmem:[%s1658_s1 + $0x90] sm:$0xff]  ;;  %s1213_s9 = smov 4   ;;  %s1215_s10 = smov 8  }
   0x2   :  { %v21_v2 = vld [vmem:[%s1658_s1] sm:$0xff]  ;;  %v1023_v5 = vpack.c.bf16 %v38_v1, %v37_v0  ;;  %v22_v6 = vld [vmem:[%s1658_s1 + $0x8] sm:$0xff]  ;;  %v40_v8 = vld [vmem:[%s1658_s1 + $0x98] sm:$0xff]  ;;  %s1217_s11 = smov 12   ;;  %s1219_s12 = smov 16  }
   0x3   :  { %v1025_v9 = vpack.c.bf16 %v22_v6, %v21_v2  ;;  %v1027_v10 = vpack.c.bf16 %v40_v8, %v39_v7  ;;  %v23_v11 = vld [vmem:[%s1658_s1 + $0x10] sm:$0xff]  ;;  %v24_v12 = vld [vmem:[%s1658_s1 + $0x18] sm:$0xff]  ;;  %v53_v13 = vld [vmem:[%s1658_s1 + $0x100] sm:$0xff]  ;;  %s1221_s13 = smov 20   ;;  %s1223_s14 = smov 24  }
   0x4   :  { %1024 = vmatprep.subr.bf16.mxu0 %v1023_v5  ;;  %v54_v14 = vld [vmem:[%s1658_s1 + $0x108] sm:$0xff]  ;;  %v41_v15 = vld [vmem:[%s1658_s1 + $0xa0] sm:$0xff]  ;;  %v1029_v17 = vpack.c.bf16 %v24_v12, %v23_v11  ;;  %v55_v19 = vld [vmem:[%s1658_s1 + $0x110] sm:$0xff]  ;;  %s1225_s15 = smov 28   ;;  %s1227_s16 = smov 32  }
   0x5   :  { %v42_v16 = vld [vmem:[%s1658_s1 + $0xa8] sm:$0xff]  ;;  %1026 = vmatpush3.bf16.msra.mxu0 %v1025_v9  ;;  %v1056_v18 = vpack.c.bf16 %v54_v14, %v53_v13  ;;  %v25_v21 = vld [vmem:[%s1658_s1 + $0x20] sm:$0xff]  ;;  %v56_v23 = vld [vmem:[%s1658_s1 + $0x118] sm:$0xff]  ;;  %s1229_s17 = smov 36  }
   0x6   :  { %1028 = vmatprep.subr.bf16.mxu0 %v1027_v10  ;;  %v1031_v20 = vpack.c.bf16 %v42_v16, %v41_v15  ;;  %v26_v22 = vld [vmem:[%s1658_s1 + $0x28] sm:$0xff]  ;;  %v1059_v24 = vpack.c.bf16 %v56_v23, %v55_v19  ;;  %v43_v25 = vld [vmem:[%s1658_s1 + $0xb0] sm:$0xff]  ;;  %v44_v26 = vld [vmem:[%s1658_s1 + $0xb8] sm:$0xff] }
   0x7   :  { %1057 = vmatpush3.bf16.msra.mxu1 %v1056_v18  ;;  %v57_v27 = vld [vmem:[%s1658_s1 + $0x120] sm:$0xff]  ;;  %v58_v28 = vld [vmem:[%s1658_s1 + $0x128] sm:$0xff]  ;;  %v1033_v29 = vpack.c.bf16 %v26_v22, %v25_v21  ;;  %v1035_v30 = vpack.c.bf16 %v44_v26, %v43_v25  ;;  %v27_v31 = vld [vmem:[%s1658_s1 + $0x30] sm:$0xff] }
   0x8   :  { %1058 = vmatprep.subr.bf16.mxu1 %v1206_v3  ;;  %v28_v32 = vld [vmem:[%s1658_s1 + $0x38] sm:$0xff]  ;;  %v1062_v33 = vpack.c.bf16 %v58_v28, %v57_v27  ;;  %v45_v34 = vld [vmem:[%s1658_s1 + $0xc0] sm:$0xff]  ;;  %v46_v35 = vld [vmem:[%s1658_s1 + $0xc8] sm:$0xff] }
   0x9   :  { %1030 = vmatpush3.bf16.msra.mxu0 %v1029_v17  ;;  %v59_v36 = vld [vmem:[%s1658_s1 + $0x130] sm:$0xff]  ;;  %v60_v37 = vld [vmem:[%s1658_s1 + $0x138] sm:$0xff]  ;;  %v1037_v38 = vpack.c.bf16 %v28_v32, %v27_v31  ;;  %v1039_v39 = vpack.c.bf16 %v46_v35, %v45_v34  ;;  %v29_v40 = vld [vmem:[%s1658_s1 + $0x40] sm:$0xff]  ;;  %v1211_v32 = vmov 3  }
   0xa   :  { %1032 = vmatprep.subr.bf16.mxu0 %v1031_v20  ;;  %v30_v41 = vld [vmem:[%s1658_s1 + $0x48] sm:$0xff]  ;;  %v1065_v42 = vpack.c.bf16 %v60_v37, %v59_v36  ;;  %v47_v43 = vld [vmem:[%s1658_s1 + $0xd0] sm:$0xff]  ;;  %v48_v44 = vld [vmem:[%s1658_s1 + $0xd8] sm:$0xff]  ;;  %1105 = vset.pattern.permute.xlu1 %v1211_v32 }
   0xb   :  { %1060 = vmatpush3.bf16.msra.mxu1 %v1059_v24  ;;  %v61_v45 = vld [vmem:[%s1658_s1 + $0x140] sm:$0xff]  ;;  %v62_v46 = vld [vmem:[%s1658_s1 + $0x148] sm:$0xff]  ;;  %v1041_v48 = vpack.c.bf16 %v30_v41, %v29_v40  ;;  %v1043_v50 = vpack.c.bf16 %v48_v44, %v47_v43  ;;  %v31_v51 = vld [vmem:[%s1658_s1 + $0x50] sm:$0xff] }
   0xc   :  { %1061 = vmatprep.subr.bf16.mxu1 %v1206_v3  ;;  %v19_v47 = vld [vmem:[%s1659_s0] sm:$0xff]  ;;  %v32_v52 = vld [vmem:[%s1658_s1 + $0x58] sm:$0xff]  ;;  %v1068_v53 = vpack.c.bf16 %v62_v46, %v61_v45  ;;  %v50_v55 = vld [vmem:[%s1658_s1 + $0xe8] sm:$0xff] }
   0xd   :  { %1034 = vmatpush3.bf16.msra.mxu0 %v1033_v29  ;;  %v70_v49 = vcombine.high %v19_v47, %v19_v47  ;;  %v49_v54 = vld [vmem:[%s1658_s1 + $0xe0] sm:$0xff]  ;;  %v63_v56 = vld [vmem:[%s1658_s1 + $0x150] sm:$0xff]  ;;  %v64_v57 = vld [vmem:[%s1658_s1 + $0x158] sm:$0xff]  ;;  %v1045_v58 = vpack.c.bf16 %v32_v52, %v31_v51 }
   0xe   :  { %1036 = vmatprep.subr.bf16.mxu0 %v1035_v30  ;;  %v1047_v59 = vpack.c.bf16 %v50_v55, %v49_v54  ;;  %v33_v60 = vld [vmem:[%s1658_s1 + $0x60] sm:$0xff]  ;;  %v34_v61 = vld [vmem:[%s1658_s1 + $0x68] sm:$0xff]  ;;  %v1071_v62 = vpack.c.bf16 %v64_v57, %v63_v56  ;;  %v51_v63 = vld [vmem:[%s1658_s1 + $0xf0] sm:$0xff] }
   0xf   :  { %1063 = vmatpush3.bf16.msra.mxu1 %v1062_v33  ;;  %136 = vmatprep.mubr.f32.mxu0 %v70_v49  ;;  %v52_v0 = vld [vmem:[%s1658_s1 + $0xf8] sm:$0xff]  ;;  %v65_v1 = vld [vmem:[%s1658_s1 + $0x160] sm:$0xff]  ;;  %v66_v2 = vld [vmem:[%s1658_s1 + $0x168] sm:$0xff]  ;;  %v1049_v4 = vpack.c.bf16 %v34_v61, %v33_v60  ;;  %v1214_v49 = vmov 7  }
  0x10   :  { %1064 = vmatprep.subr.bf16.mxu1 %v1206_v3  ;;  %v1051_v5 = vpack.c.bf16 %v52_v0, %v51_v63  ;;  %v35_v6 = vld [vmem:[%s1658_s1 + $0x70] sm:$0xff]  ;;  %v36_v7 = vld [vmem:[%s1658_s1 + $0x78] sm:$0xff]  ;;  %v1074_v8 = vpack.c.bf16 %v66_v2, %v65_v1  ;;  %v20_v13 = vld [vmem:[%s1659_s0 + $0x8] sm:$0xf]  ;;  %s1209_s0 = smov 126   ;;  %1115 = vset.pattern.permute.xlu0 %v1214_v49  ;;  %v1216_v2 = vmov 11  }
  0x11   :  { %1038 = vmatpush3.bf16.msra.mxu0 %v1037_v38  ;;  %v67_v9 = vld [vmem:[%s1658_s1 + $0x170] sm:$0xff]  ;;  %v68_v10 = vld [vmem:[%s1658_s1 + $0x178] sm:$0xff]  ;;  %v1053_v11 = vpack.c.bf16 %v36_v7, %v35_v6  ;;  %v14_v16 = vld [vmem:[%s1660_s2] sm:$0xff] }
  0x12   :  { %1040 = vmatprep.subr.bf16.mxu0 %v1039_v39  ;;  %v1077_v12 = vpack.c.bf16 %v68_v10, %v67_v9  ;;  %v1416_v17 = vld [vmem:[%s1660_s2 + $0x8] sm:$0xff] }
  0x13   :  { %1066 = vmatpush3.bf16.msra.mxu1 %v1065_v42  ;;  %v212_v21 = vmul.f32 0.0, %v1416_v17 }
  0x14   :  { %1067 = vmatprep.subr.bf16.mxu1 %v1206_v3 }
  0x15   :  { %1042 = vmatpush3.bf16.msra.mxu0 %v1041_v48 }
  0x16   :  { %1044 = vmatprep.subr.bf16.mxu0 %v1043_v50 }
  0x17   :  { %1069 = vmatpush3.bf16.msra.mxu1 %v1068_v53 }
  0x18   :  { %1070 = vmatprep.subr.bf16.mxu1 %v1206_v3 }
  0x19   :  { %1046 = vmatpush3.bf16.msra.mxu0 %v1045_v58 }
  0x1a   :  { %1048 = vmatprep.subr.bf16.mxu0 %v1047_v59 }
  0x1b   :  { %1072 = vmatpush3.bf16.msra.mxu1 %v1071_v62 }
  0x1c   :  { %1073 = vmatprep.subr.bf16.mxu1 %v1206_v3 }
  0x1d   :  { %1050 = vmatpush3.bf16.msra.mxu0 %v1049_v4 }
  0x1e   :  { %1052 = vmatprep.subr.bf16.mxu0 %v1051_v5 }
  0x1f   :  { %1075 = vmatpush3.bf16.msra.mxu1 %v1074_v8 }
  0x20   :  { %1076 = vmatprep.subr.bf16.mxu1 %v1206_v3 }
  0x21   :  { %1054 = vmatpush3.bf16.msra.mxu0 %v1053_v11 }
  0x23   :  { %1078 = vmatpush3.bf16.msra.mxu1 %v1077_v12 }
  0x24   :  { %137 = vmatmul.mubr.f32.vlgmr.msra.gmra.mrb[0].mxu0 %v19_v47 }
  0x26   :  { %1021 = vmatmul.mubr.f32.vlgmr.msra.gmra.mrb[0].mxu1 %v20_v13 }
  0xf7   :  { %v968_v14 = vpop.f32.mrb[0].mxu0 }
  0xf8   :  { %v969_v15 = vpop.f32.mrb[1].mxu0 }
  0xf9   :  { %v970_v3 = vadd.f32 %v969_v15, %v968_v14  ;;  %v208_v18 = vpop.f32.mrb[0].mxu1 }
  0xfa   :  { %v1022_v19 = vpop.f32.mrb[1].mxu1 }
  0xfb   :  { %v139_v20 = vadd.f32 %v970_v3, %v14_v16 }
  0xfd   :  { %v1419_v22 = vadd.f32 %v208_v18, %v139_v20  ;;  %v1218_v20 = vmov 15  }
  0xff   :  { %v213_v23 = vadd.f32 %v212_v21, %v1419_v22 }
 0x101   :  { %1126 = vtanh.f32 %v213_v23 }
 0x10b   :  { %v1127_v24 = vpop.eup %1126 }
 0x10c   :  { %219 = vrot.lane.b32.xlu0 %v1127_v24, %s1209_s0  ;;  %v215_v25 = vadd.f32 1.0, %v1127_v24 }
 0x10e   :  { %v216_v26 = vmul.f32 0.5, %v215_v25 }
 0x110   :  { %v217_v29 = vmul.f32 0.0, %v216_v26 }
 0x17e   :  { %v220_v27 = vpop.permute.xlu0 %219 }
 0x17f   :  { %v222_v28 = vmul.f32 %v220_v27, %v216_v26 }
 0x181   :  { %224 = vrot.lane.b32.xlu0 %v222_v28, %s1210_s7 }
 0x1f3   :  { %v225_v30 = vpop.permute.xlu0 %224 }
 0x1f4   :  { %v227_v31 = vadd.f32 %v225_v30, %v217_v29 }
 0x1f6   :  { %1128 = vtanh.f32 %v227_v31 }
 0x200   :  { %v1129_v33 = vpop.eup %1128 }
 0x201   :  { %230 = vrot.lane.b32.xlu1 %v1129_v33, %s1212_s8 }
 0x273   :  { %v231_v34 = vpop.permute.xlu1 %230 }
 0x274   :  { %v1426_v35 = vmul.f32 %v231_v34, %v216_v26 }
 0x276   :  { %274 = vperm.xlu1 %1105, %v1426_v35  }
 0x27a   :  { %1106 = vset.pattern.permute.xlu1 %v1214_v49 }
 0x2f5   :  { %v275_v36 = vpop.permute.xlu1 %274 }
 0x2f6   :  { %v277_v37 = vmul.f32 %v275_v36, %v1416_v17 }
 0x2f8   :  { %279 = vrot.lane.b32.xlu0 %v277_v37, %s1213_s9 }
 0x2fc   :  { %287 = vrot.lane.b32.xlu0 %v227_v31, %s1213_s9 }
 0x36a   :  { %v280_v38 = vpop.permute.xlu0 %279 }
 0x36b   :  { %v282_v39 = vadd.f32 %v280_v38, %v1419_v22 }
 0x36d   :  { %1130 = vtanh.f32 %v282_v39 }
 0x36e   :  { %v288_v45 = vpop.permute.xlu0 %287 }
 0x377   :  { %v1131_v40 = vpop.eup %1130 }
 0x378   :  { %292 = vrot.lane.b32.xlu1 %v1131_v40, %s1209_s0  ;;  %v284_v41 = vadd.f32 1.0, %v1131_v40  ;;  %v1220_v40 = vmov 19  }
 0x37a   :  { %v285_v42 = vmul.f32 0.5, %v284_v41 }
 0x37c   :  { %v290_v46 = vmul.f32 %v288_v45, %v285_v42 }
 0x3ea   :  { %v293_v43 = vpop.permute.xlu1 %292 }
 0x3eb   :  { %v295_v44 = vmul.f32 %v293_v43, %v285_v42 }
 0x3ed   :  { %297 = vrot.lane.b32.xlu1 %v295_v44, %s1210_s7 }
 0x45f   :  { %v298_v47 = vpop.permute.xlu1 %297 }
 0x460   :  { %v300_v48 = vadd.f32 %v298_v47, %v290_v46 }
 0x462   :  { %1132 = vtanh.f32 %v300_v48 }
 0x46c   :  { %v1133_v50 = vpop.eup %1132 }
 0x46d   :  { %303 = vrot.lane.b32.xlu0 %v1133_v50, %s1212_s8 }
 0x4df   :  { %v304_v51 = vpop.permute.xlu0 %303 }
 0x4e0   :  { %v1436_v52 = vmul.f32 %v304_v51, %v285_v42 }
 0x4e2   :  { %347 = vperm.xlu1 %1106, %v1436_v52  }
 0x4e6   :  { %1107 = vset.pattern.permute.xlu1 %v1216_v2 }
 0x561   :  { %v348_v53 = vpop.permute.xlu1 %347 }
 0x562   :  { %v350_v54 = vmul.f32 %v348_v53, %v1416_v17 }
 0x564   :  { %352 = vrot.lane.b32.xlu0 %v350_v54, %s1215_s10 }
 0x568   :  { %360 = vrot.lane.b32.xlu0 %v300_v48, %s1213_s9 }
 0x5d6   :  { %v353_v55 = vpop.permute.xlu0 %352 }
 0x5d7   :  { %v355_v56 = vadd.f32 %v353_v55, %v1419_v22 }
 0x5d9   :  { %1134 = vtanh.f32 %v355_v56 }
 0x5da   :  { %v361_v62 = vpop.permute.xlu0 %360 }
 0x5e3   :  { %v1135_v57 = vpop.eup %1134 }
 0x5e4   :  { %365 = vrot.lane.b32.xlu1 %v1135_v57, %s1209_s0  ;;  %v357_v58 = vadd.f32 1.0, %v1135_v57 }
 0x5e6   :  { %v358_v59 = vmul.f32 0.5, %v357_v58  ;;  %v1222_v58 = vmov 23  }
 0x5e8   :  { %v363_v63 = vmul.f32 %v361_v62, %v358_v59 }
 0x656   :  { %v366_v60 = vpop.permute.xlu1 %365 }
 0x657   :  { %v368_v61 = vmul.f32 %v366_v60, %v358_v59 }
 0x659   :  { %370 = vrot.lane.b32.xlu1 %v368_v61, %s1210_s7 }
 0x6cb   :  { %v371_v0 = vpop.permute.xlu1 %370 }
 0x6cc   :  { %v373_v1 = vadd.f32 %v371_v0, %v363_v63 }
 0x6ce   :  { %1136 = vtanh.f32 %v373_v1 }
 0x6d8   :  { %v1137_v4 = vpop.eup %1136 }
 0x6d9   :  { %376 = vrot.lane.b32.xlu0 %v1137_v4, %s1212_s8 }
 0x74b   :  { %v377_v5 = vpop.permute.xlu0 %376 }
 0x74c   :  { %v1446_v6 = vmul.f32 %v377_v5, %v358_v59 }
 0x74e   :  { %420 = vperm.xlu1 %1107, %v1446_v6  }
 0x752   :  { %1108 = vset.pattern.permute.xlu1 %v1218_v20 }
 0x7cd   :  { %v421_v7 = vpop.permute.xlu1 %420 }
 0x7ce   :  { %v423_v8 = vmul.f32 %v421_v7, %v1416_v17 }
 0x7d0   :  { %425 = vrot.lane.b32.xlu0 %v423_v8, %s1217_s11 }
 0x7d4   :  { %433 = vrot.lane.b32.xlu0 %v373_v1, %s1213_s9 }
 0x842   :  { %v426_v9 = vpop.permute.xlu0 %425 }
 0x843   :  { %v428_v10 = vadd.f32 %v426_v9, %v1419_v22 }
 0x845   :  { %1138 = vtanh.f32 %v428_v10 }
 0x846   :  { %v434_v16 = vpop.permute.xlu0 %433 }
 0x84f   :  { %v1139_v11 = vpop.eup %1138 }
 0x850   :  { %438 = vrot.lane.b32.xlu1 %v1139_v11, %s1209_s0  ;;  %v430_v12 = vadd.f32 1.0, %v1139_v11 }
 0x852   :  { %v431_v13 = vmul.f32 0.5, %v430_v12 }
 0x854   :  { %v436_v3 = vmul.f32 %v434_v16, %v431_v13 }
 0x8c2   :  { %v439_v14 = vpop.permute.xlu1 %438 }
 0x8c3   :  { %v441_v15 = vmul.f32 %v439_v14, %v431_v13  ;;  %v1224_v14 = vmov 27  }
 0x8c5   :  { %443 = vrot.lane.b32.xlu1 %v441_v15, %s1210_s7 }
 0x937   :  { %v444_v18 = vpop.permute.xlu1 %443 }
 0x938   :  { %v446_v19 = vadd.f32 %v444_v18, %v436_v3 }
 0x93a   :  { %1140 = vtanh.f32 %v446_v19 }
 0x944   :  { %v1141_v21 = vpop.eup %1140 }
 0x945   :  { %449 = vrot.lane.b32.xlu0 %v1141_v21, %s1212_s8 }
 0x9b7   :  { %v450_v23 = vpop.permute.xlu0 %449 }
 0x9b8   :  { %v1456_v24 = vmul.f32 %v450_v23, %v431_v13 }
 0x9ba   :  { %493 = vperm.xlu1 %1108, %v1456_v24  }
 0x9be   :  { %1109 = vset.pattern.permute.xlu1 %v1220_v40 }
 0xa39   :  { %v494_v25 = vpop.permute.xlu1 %493 }
 0xa3a   :  { %v496_v26 = vmul.f32 %v494_v25, %v1416_v17 }
 0xa3c   :  { %498 = vrot.lane.b32.xlu0 %v496_v26, %s1219_s12 }
 0xa40   :  { %506 = vrot.lane.b32.xlu0 %v446_v19, %s1213_s9 }
 0xaae   :  { %v499_v27 = vpop.permute.xlu0 %498 }
 0xaaf   :  { %v501_v28 = vadd.f32 %v499_v27, %v1419_v22 }
 0xab1   :  { %1142 = vtanh.f32 %v501_v28 }
 0xab2   :  { %v507_v36 = vpop.permute.xlu0 %506 }
 0xabb   :  { %v1143_v29 = vpop.eup %1142 }
 0xabc   :  { %511 = vrot.lane.b32.xlu1 %v1143_v29, %s1209_s0  ;;  %v503_v30 = vadd.f32 1.0, %v1143_v29 }
 0xabe   :  { %v504_v31 = vmul.f32 0.5, %v503_v30 }
 0xac0   :  { %v509_v37 = vmul.f32 %v507_v36, %v504_v31  ;;  %v1226_v36 = vmov 31  }
 0xb2e   :  { %v512_v33 = vpop.permute.xlu1 %511 }
 0xb2f   :  { %v514_v34 = vmul.f32 %v512_v33, %v504_v31 }
 0xb31   :  { %516 = vrot.lane.b32.xlu1 %v514_v34, %s1210_s7 }
 0xba3   :  { %v517_v38 = vpop.permute.xlu1 %516 }
 0xba4   :  { %v519_v39 = vadd.f32 %v517_v38, %v509_v37 }
 0xba6   :  { %1144 = vtanh.f32 %v519_v39 }
 0xbb0   :  { %v1145_v41 = vpop.eup %1144 }
 0xbb1   :  { %522 = vrot.lane.b32.xlu0 %v1145_v41, %s1212_s8 }
 0xc23   :  { %v523_v42 = vpop.permute.xlu0 %522 }
 0xc24   :  { %v1466_v43 = vmul.f32 %v523_v42, %v504_v31 }
 0xc26   :  { %566 = vperm.xlu1 %1109, %v1466_v43  }
 0xc2a   :  { %1110 = vset.pattern.permute.xlu1 %v1222_v58 }
 0xca5   :  { %v567_v44 = vpop.permute.xlu1 %566 }
 0xca6   :  { %v569_v45 = vmul.f32 %v567_v44, %v1416_v17 }
 0xca8   :  { %571 = vrot.lane.b32.xlu0 %v569_v45, %s1221_s13 }
 0xcac   :  { %579 = vrot.lane.b32.xlu0 %v519_v39, %s1213_s9 }
 0xd1a   :  { %v572_v46 = vpop.permute.xlu0 %571 }
 0xd1b   :  { %v574_v47 = vadd.f32 %v572_v46, %v1419_v22 }
 0xd1d   :  { %1146 = vtanh.f32 %v574_v47 }
 0xd1e   :  { %v580_v54 = vpop.permute.xlu0 %579 }
 0xd27   :  { %v1147_v48 = vpop.eup %1146 }
 0xd28   :  { %584 = vrot.lane.b32.xlu1 %v1147_v48, %s1209_s0  ;;  %v576_v49 = vadd.f32 1.0, %v1147_v48 }
 0xd2a   :  { %v577_v50 = vmul.f32 0.5, %v576_v49 }
 0xd2c   :  { %v582_v55 = vmul.f32 %v580_v54, %v577_v50 }
 0xd9a   :  { %v585_v51 = vpop.permute.xlu1 %584 }
 0xd9b   :  { %v587_v53 = vmul.f32 %v585_v51, %v577_v50 }
 0xd9d   :  { %589 = vrot.lane.b32.xlu1 %v587_v53, %s1210_s7 }
 0xe0f   :  { %v590_v56 = vpop.permute.xlu1 %589 }
 0xe10   :  { %v592_v57 = vadd.f32 %v590_v56, %v582_v55  ;;  %v1228_v56 = vmov 35  }
 0xe12   :  { %1148 = vtanh.f32 %v592_v57 }
 0xe1c   :  { %v1149_v59 = vpop.eup %1148 }
 0xe1d   :  { %595 = vrot.lane.b32.xlu0 %v1149_v59, %s1212_s8 }
 0xe8f   :  { %v596_v60 = vpop.permute.xlu0 %595 }
 0xe90   :  { %v1476_v61 = vmul.f32 %v596_v60, %v577_v50 }
 0xe92   :  { %639 = vperm.xlu1 %1110, %v1476_v61  }
 0xe96   :  { %1111 = vset.pattern.permute.xlu1 %v1224_v14 }
 0xf11   :  { %v640_v62 = vpop.permute.xlu1 %639 }
 0xf12   :  { %v642_v63 = vmul.f32 %v640_v62, %v1416_v17 }
 0xf14   :  { %644 = vrot.lane.b32.xlu0 %v642_v63, %s1223_s14 }
 0xf18   :  { %652 = vrot.lane.b32.xlu0 %v592_v57, %s1213_s9 }
 0xf86   :  { %v645_v0 = vpop.permute.xlu0 %644 }
 0xf87   :  { %v647_v1 = vadd.f32 %v645_v0, %v1419_v22 }
 0xf89   :  { %1150 = vtanh.f32 %v647_v1 }
 0xf8a   :  { %v653_v10 = vpop.permute.xlu0 %652 }
 0xf93   :  { %v1151_v4 = vpop.eup %1150 }
 0xf94   :  { %657 = vrot.lane.b32.xlu1 %v1151_v4, %s1209_s0  ;;  %v649_v5 = vadd.f32 1.0, %v1151_v4 }
 0xf96   :  { %v650_v7 = vmul.f32 0.5, %v649_v5  ;;  %v1518_v5 = vmul.f32 0.70710677, %v1426_v35 }
 0xf98   :  { %v655_v11 = vmul.f32 %v653_v10, %v650_v7  ;;  %vm236_vm1 = vcmp.ge.f32.partialorder %v1518_v5, 0.0 }
0x1006   :  { %v658_v8 = vpop.permute.xlu1 %657 }
0x1007   :  { %v660_v9 = vmul.f32 %v658_v8, %v650_v7 }
0x1009   :  { %662 = vrot.lane.b32.xlu1 %v660_v9, %s1210_s7  ;;  %v1526_v9 = vmul.f32 0.70710677, %v1456_v24 }
0x100b   :  { %vm455_vm3 = vcmp.ge.f32.partialorder %v1526_v9, 0.0 }
0x107b   :  { %v663_v12 = vpop.permute.xlu1 %662 }
0x107c   :  { %v665_v13 = vadd.f32 %v663_v12, %v655_v11  ;;  %v457_v11 = vand.u32 2147483647, %v1526_v9  ;;  %v1530_v12 = vmul.f32 0.70710677, %v1476_v61 }
0x107e   :  { %1152 = vtanh.f32 %v665_v13  ;;  %vm601_vm4 = vcmp.ge.f32.partialorder %v1530_v12, 0.0 }
0x1088   :  { %v1153_v15 = vpop.eup %1152 }
0x1089   :  { %668 = vrot.lane.b32.xlu0 %v1153_v15, %s1212_s8  ;;  %v458_v15 = vmul.f32 0.3275911, %v457_v11 }
0x10fb   :  { %v669_v16 = vpop.permute.xlu0 %668 }
0x10fc   :  { %v1486_v3 = vmul.f32 %v669_v16, %v650_v7  ;;  %v1533_v16 = vand.u32 2147483647, %v1530_v12 }
0x10fe   :  { %712 = vperm.xlu1 %1111, %v1486_v3  }
0x1102   :  { %1112 = vset.pattern.permute.xlu1 %v1226_v36 }
0x117d   :  { %v713_v18 = vpop.permute.xlu1 %712 }
0x117e   :  { %v715_v19 = vmul.f32 %v713_v18, %v1416_v17  ;;  %v1536_v18 = vmul.f32 0.70710677, %v1486_v3 }
0x1180   :  { %717 = vrot.lane.b32.xlu0 %v715_v19, %s1225_s15  ;;  %v459_v19 = vadd.f32 1.0, %v458_v15  ;;  %vm674_vm5 = vcmp.ge.f32.partialorder %v1536_v18, 0.0 }
0x1184   :  { %725 = vrot.lane.b32.xlu0 %v665_v13, %s1213_s9 }
0x11f2   :  { %v718_v21 = vpop.permute.xlu0 %717 }
0x11f3   :  { %v720_v23 = vadd.f32 %v718_v21, %v1419_v22  ;;  %v604_v21 = vmul.f32 0.3275911, %v1533_v16 }
0x11f5   :  { %1154 = vtanh.f32 %v720_v23  ;;  %v1540_v23 = vand.u32 2147483647, %v1536_v18 }
0x11f6   :  { %v726_v30 = vpop.permute.xlu0 %725 }
0x11ff   :  { %v1155_v25 = vpop.eup %1154 }
0x1200   :  { %730 = vrot.lane.b32.xlu1 %v1155_v25, %s1209_s0  ;;  %v722_v26 = vadd.f32 1.0, %v1155_v25 }
0x1202   :  { %v723_v27 = vmul.f32 0.5, %v722_v26 }
0x1204   :  { %v728_v31 = vmul.f32 %v726_v30, %v723_v27 }
0x1272   :  { %v731_v28 = vpop.permute.xlu1 %730 }
0x1273   :  { %v733_v29 = vmul.f32 %v731_v28, %v723_v27  ;;  %v677_v28 = vmul.f32 0.3275911, %v1540_v23 }
0x1275   :  { %735 = vrot.lane.b32.xlu1 %v733_v29, %s1210_s7 }
0x12e7   :  { %v736_v33 = vpop.permute.xlu1 %735 }
0x12e8   :  { %v738_v34 = vadd.f32 %v736_v33, %v728_v31  ;;  %v678_v33 = vadd.f32 1.0, %v677_v28 }
0x12ea   :  { %1156 = vtanh.f32 %v738_v34 }
0x12f4   :  { %v1157_v37 = vpop.eup %1156 }
0x12f5   :  { %741 = vrot.lane.b32.xlu0 %v1157_v37, %s1212_s8 }
0x1367   :  { %v742_v38 = vpop.permute.xlu0 %741 }
0x1368   :  { %v1496_v39 = vmul.f32 %v742_v38, %v723_v27  ;;  %v605_v27 = vadd.f32 1.0, %v604_v21  ;;  %v471_v21 = vsub.f32 0.0, %v457_v11 }
0x136a   :  { %785 = vperm.xlu1 %1112, %v1496_v39  }
0x136e   :  { %1113 = vset.pattern.permute.xlu1 %v1228_v56 }
0x13e9   :  { %v786_v41 = vpop.permute.xlu1 %785 }
0x13ea   :  { %v788_v42 = vmul.f32 %v786_v41, %v1416_v17 }
0x13ec   :  { %790 = vrot.lane.b32.xlu0 %v788_v42, %s1227_s16 }
0x13f0   :  { %798 = vrot.lane.b32.xlu0 %v738_v34, %s1213_s9 }
0x145e   :  { %v791_v44 = vpop.permute.xlu0 %790 }
0x145f   :  { %v793_v45 = vadd.f32 %v791_v44, %v1419_v22 }
0x1461   :  { %1158 = vtanh.f32 %v793_v45 }
0x1462   :  { %v799_v51 = vpop.permute.xlu0 %798 }
0x146b   :  { %v1159_v46 = vpop.eup %1158 }
0x146c   :  { %803 = vrot.lane.b32.xlu1 %v1159_v46, %s1209_s0  ;;  %v795_v47 = vadd.f32 1.0, %v1159_v46 }
0x146e   :  { %v796_v48 = vmul.f32 0.5, %v795_v47 }
0x1470   :  { %v801_v53 = vmul.f32 %v799_v51, %v796_v48 }
0x14de   :  { %v804_v49 = vpop.permute.xlu1 %803 }
0x14df   :  { %v806_v50 = vmul.f32 %v804_v49, %v796_v48 }
0x14e1   :  { %808 = vrot.lane.b32.xlu1 %v806_v50, %s1210_s7 }
0x1553   :  { %v809_v54 = vpop.permute.xlu1 %808 }
0x1554   :  { %v811_v55 = vadd.f32 %v809_v54, %v801_v53 }
0x1556   :  { %1160 = vtanh.f32 %v811_v55 }
0x1560   :  { %v1161_v57 = vpop.eup %1160 }
0x1561   :  { %814 = vrot.lane.b32.xlu0 %v1161_v57, %s1212_s8 }
0x15d3   :  { %v815_v59 = vpop.permute.xlu0 %814 }
0x15d4   :  { %v1506_v60 = vmul.f32 %v815_v59, %v796_v48 }
0x15d6   :  { %858 = vperm.xlu1 %1113, %v1506_v60   ;;  %v1543_v25 = vmul.f32 0.70710677, %v1506_v60 }
0x15d8   :  { %v1547_v29 = vand.u32 2147483647, %v1543_v25  ;;  %vm820_vm6 = vcmp.ge.f32.partialorder %v1543_v25, 0.0 }
0x15da   :  { %1114 = vset.pattern.permute.xlu1 %v1211_v32  ;;  %v238_v32 = vand.u32 2147483647, %v1518_v5  ;;  %v823_v34 = vmul.f32 0.3275911, %v1547_v29 }
0x15dc   :  { %v239_v7 = vmul.f32 0.3275911, %v238_v32  ;;  %v824_v42 = vadd.f32 1.0, %v823_v34  ;;  %v252_v49 = vsub.f32 0.0, %v238_v32 }
0x15de   :  { %v253_v57 = vmul.f32 %v252_v49, %v238_v32 }
0x1655   :  { %v859_v62 = vpop.permute.xlu1 %858 }
0x1656   :  { %v861_v63 = vmul.f32 %v859_v62, %v1416_v17  ;;  %v1522_v17 = vmul.f32 0.70710677, %v1446_v6 }
0x1658   :  { %863 = vrot.lane.b32.xlu0 %v861_v63, %s1229_s17  ;;  %v384_v8 = vand.u32 2147483647, %v1522_v17  ;;  %vm382_vm2 = vcmp.ge.f32.partialorder %v1522_v17, 0.0 }
0x165a   :  { %v385_v10 = vmul.f32 0.3275911, %v384_v8  ;;  %v398_v62 = vsub.f32 0.0, %v384_v8 }
0x165c   :  { %871 = vrot.lane.b32.xlu0 %v811_v55, %s1213_s9  ;;  %v386_v13 = vadd.f32 1.0, %v385_v10  ;;  %v399_v15 = vmul.f32 %v398_v62, %v384_v8 }
0x165e   :  { %v400_v34 = vmul.f32 1.442695, %v399_v15 }
0x16ca   :  { %v864_v0 = vpop.permute.xlu0 %863 }
0x16cb   :  { %v866_v1 = vadd.f32 %v864_v0, %v1419_v22  ;;  %v240_v22 = vadd.f32 1.0, %v239_v7 }
0x16cd   :  { %1162 = vtanh.f32 %v866_v1 }
0x16ce   :  { %1164 = vrcp.f32 %v240_v22  ;;  %v254_v22 = vmul.f32 1.442695, %v253_v57 }
0x16cf   :  { %1166 = vrcp.f32 %v386_v13 }
0x16d0   :  { %1168 = vrcp.f32 %v459_v19 }
0x16d1   :  { %1170 = vrcp.f32 %v605_v27 }
0x16d2   :  { %1172 = vrcp.f32 %v678_v33 }
0x16d3   :  { %1174 = vrcp.f32 %v824_v42 }
0x16d4   :  { %1176 = vpow2.f32 %v254_v22 }
0x16d5   :  { %1178 = vpow2.f32 %v400_v34 }
0x16d7   :  { %v1513_v4 = vpop.eup %1162 }
0x16d8   :  { %876 = vrot.lane.b32.xlu1 %v1513_v4, %s1209_s0  ;;  %v1165_v26 = vpop.eup %1164 }
0x16d9   :  { %v243_v30 = vmul.f32 1.0614054, %v1165_v26  ;;  %v1549_v31 = vpop.eup %1166 }
0x16da   :  { %v389_v38 = vmul.f32 1.0614054, %v1549_v31  ;;  %v1553_v41 = vpop.eup %1168 }
0x16db   :  { %v244_v37 = vadd.f32 -1.4531521, %v243_v30  ;;  %v462_v46 = vmul.f32 1.0614054, %v1553_v41  ;;  %v1556_v47 = vpop.eup %1170 }
0x16dc   :  { %v390_v45 = vadd.f32 -1.4531521, %v389_v38  ;;  %v608_v53 = vmul.f32 1.0614054, %v1556_v47  ;;  %v1560_v55 = vpop.eup %1172  ;;  %v472_v38 = vmul.f32 %v471_v21, %v457_v11  ;;  %v690_v11 = vsub.f32 0.0, %v1540_v23 }
0x16dd   :  { %v245_v44 = vmul.f32 %v1165_v26, %v244_v37  ;;  %v463_v51 = vadd.f32 -1.4531521, %v462_v46  ;;  %v681_v7 = vmul.f32 1.0614054, %v1560_v55  ;;  %v1565_v13 = vpop.eup %1174 }
0x16de   :  { %v391_v50 = vmul.f32 %v1549_v31, %v390_v45  ;;  %v609_v0 = vadd.f32 -1.4531521, %v608_v53  ;;  %v827_v33 = vmul.f32 1.0614054, %v1565_v13  ;;  %v691_v15 = vmul.f32 %v690_v11, %v1540_v23 }
0x16df   :  { %v246_v48 = vadd.f32 1.4214138, %v245_v44  ;;  %v464_v63 = vmul.f32 %v1553_v41, %v463_v51  ;;  %v682_v32 = vadd.f32 -1.4531521, %v681_v7  ;;  %v617_v44 = vsub.f32 0.0, %v1533_v16 }
0x16e0   :  { %v392_v59 = vadd.f32 1.4214138, %v391_v50  ;;  %v610_v27 = vmul.f32 %v1556_v47, %v609_v0  ;;  %v473_v50 = vmul.f32 1.442695, %v472_v38  ;;  %v1177_v0 = vpop.eup %1176 }
0x16e1   :  { %v247_v54 = vmul.f32 %v1165_v26, %v246_v48  ;;  %v465_v19 = vadd.f32 1.4214138, %v464_v63  ;;  %v683_v8 = vmul.f32 %v1560_v55, %v682_v32  ;;  %v828_v48 = vadd.f32 -1.4531521, %v827_v33 }
0x16e2   :  { %v393_v10 = vmul.f32 %v1549_v31, %v392_v59  ;;  %v611_v42 = vadd.f32 1.4214138, %v610_v27  ;;  %v618_v53 = vmul.f32 %v617_v44, %v1533_v16  ;;  %1180 = vpow2.f32 %v473_v50 }
0x16e3   :  { %v248_v1 = vadd.f32 -0.28449672, %v247_v54  ;;  %v466_v37 = vmul.f32 %v1553_v41, %v465_v19  ;;  %v684_v57 = vadd.f32 1.4214138, %v683_v8  ;;  %v829_v62 = vmul.f32 %v1565_v13, %v828_v48 }
0x16e4   :  { %v394_v30 = vadd.f32 -0.28449672, %v393_v10  ;;  %v612_v51 = vmul.f32 %v1556_v47, %v611_v42  ;;  %v619_v7 = vmul.f32 1.442695, %v618_v53  ;;  %v836_v19 = vsub.f32 0.0, %v1547_v29 }
0x16e5   :  { %v249_v28 = vmul.f32 %v1165_v26, %v248_v1  ;;  %v467_v49 = vadd.f32 -0.28449672, %v466_v37  ;;  %v685_v10 = vmul.f32 %v1560_v55, %v684_v57  ;;  %v692_v33 = vmul.f32 1.442695, %v691_v15 }
0x16e6   :  { %v395_v46 = vmul.f32 %v1549_v31, %v394_v30  ;;  %v613_v1 = vadd.f32 -0.28449672, %v612_v51  ;;  %1182 = vpow2.f32 %v619_v7  ;;  %v837_v23 = vmul.f32 %v836_v19, %v1547_v29 }
0x16e7   :  { %v250_v45 = vadd.f32 0.2548296, %v249_v28  ;;  %v468_v63 = vmul.f32 %v1553_v41, %v467_v49  ;;  %v1179_v28 = vpop.eup %1178  ;;  %v686_v30 = vadd.f32 -0.28449672, %v685_v10  ;;  %v1230_v42 = vmov -1.0  }
0x16e8   :  { %v396_v59 = vadd.f32 0.2548296, %v395_v46  ;;  %v614_v27 = vmul.f32 %v1556_v47, %v613_v1  ;;  %v237_v44 = vsel %vm236_vm1, 1.0, %v1230_v42  ;;  %1184 = vpow2.f32 %v692_v33 }
0x16e9   :  { %v251_v54 = vmul.f32 %v1165_v26, %v250_v45  ;;  %v830_v26 = vadd.f32 1.4214138, %v829_v62  ;;  %v469_v21 = vadd.f32 0.2548296, %v468_v63  ;;  %v687_v5 = vmul.f32 %v1560_v55, %v686_v30 }
0x16ea   :  { %v397_v16 = vmul.f32 %v1549_v31, %v396_v59  ;;  %v868_v31 = vadd.f32 1.0, %v1513_v4  ;;  %v615_v45 = vadd.f32 0.2548296, %v614_v27  ;;  %v838_v50 = vmul.f32 1.442695, %v837_v23 }
0x16eb   :  { %v256_v22 = vmul.f32 %v1177_v0, %v251_v54  ;;  %v831_v37 = vmul.f32 %v1565_v13, %v830_v26  ;;  %v470_v38 = vmul.f32 %v1553_v41, %v469_v21  ;;  %v383_v57 = vsel %vm382_vm2, 1.0, %v1230_v42 }
0x16ec   :  { %v402_v34 = vmul.f32 %v1179_v28, %v397_v16  ;;  %v1181_v46 = vpop.eup %1180  ;;  %v1591_v51 = vmul.f32 0.5, %v868_v31  ;;  %v616_v41 = vmul.f32 %v1556_v47, %v615_v45  ;;  %v688_v11 = vadd.f32 0.2548296, %v687_v5 }
0x16ed   :  { %v257_v32 = vsub.f32 1.0, %v256_v22  ;;  %v832_v49 = vadd.f32 -0.28449672, %v831_v37  ;;  %v475_v29 = vmul.f32 %v1181_v46, %v470_v38  ;;  %v234_v63 = vmul.f32 0.5, %v1426_v35 }
0x16ee   :  { %v403_v48 = vsub.f32 1.0, %v402_v34  ;;  %1186 = vpow2.f32 %v838_v50  ;;  %v689_v7 = vmul.f32 %v1560_v55, %v688_v11  ;;  %v456_v10 = vsel %vm455_vm3, 1.0, %v1230_v42 }
0x16ef   :  { %v258_v8 = vmul.f32 %v257_v32, %v237_v44  ;;  %v833_v62 = vmul.f32 %v1565_v13, %v832_v49  ;;  %v476_v0 = vsub.f32 1.0, %v475_v29  ;;  %v380_v19 = vmul.f32 0.5, %v1446_v6 }
0x16f0   :  { %v404_v59 = vmul.f32 %v403_v48, %v383_v57  ;;  %v1183_v17 = vpop.eup %1182  ;;  %v602_v55 = vsel %vm601_vm4, 1.0, %v1230_v42  ;;  %v453_v33 = vmul.f32 0.5, %v1456_v24  ;;  %v599_v23 = vmul.f32 0.5, %v1476_v61 }
0x16f1   :  { %v259_v54 = vadd.f32 1.0, %v258_v8  ;;  %v621_v1 = vmul.f32 %v1183_v17, %v616_v41  ;;  %v834_v15 = vadd.f32 0.2548296, %v833_v62  ;;  %v477_v16 = vmul.f32 %v476_v0, %v456_v10 }
0x16f2   :  { %v405_v22 = vadd.f32 1.0, %v404_v59  ;;  %v1185_v26 = vpop.eup %1184  ;;  %v821_v18 = vsel %vm820_vm6, 1.0, %v1230_v42  ;;  %v818_v61 = vmul.f32 0.5, %v1506_v60  ;;  %v1624_v46 = vmul.f32 0.70710677, %v1466_v43 }
0x16f3   :  { %v260_v47 = vmul.f32 %v259_v54, %v234_v63  ;;  %v622_v35 = vsub.f32 1.0, %v621_v1  ;;  %v694_v9 = vmul.f32 %v1185_v26, %v689_v7  ;;  %v835_v27 = vmul.f32 %v1565_v13, %v834_v15 }
0x16f4   :  { %v406_v21 = vmul.f32 %v405_v22, %v380_v19  ;;  %v478_v28 = vadd.f32 1.0, %v477_v16  ;;  %v675_v13 = vsel %vm674_vm5, 1.0, %v1230_v42  ;;  %v530_v48 = vand.u32 2147483647, %v1624_v46 }
0x16f5   :  { %v623_v32 = vmul.f32 %v622_v35, %v602_v55  ;;  %v695_v6 = vsub.f32 1.0, %v694_v9  ;;  %vm528_vm8 = vcmp.ge.f32.partialorder %v1624_v46, 0.0 }
0x16f6   :  { %v479_v12 = vmul.f32 %v478_v28, %v453_v33  ;;  %v531_v60 = vmul.f32 0.3275911, %v530_v48  ;;  %v544_v16 = vsub.f32 0.0, %v530_v48 }
0x16f7   :  { %v624_v37 = vadd.f32 1.0, %v623_v32 }
0x16f8   :  { %v1187_v30 = vpop.eup %1186 }
0x16f9   :  { %v840_v34 = vmul.f32 %v1187_v30, %v835_v27  ;;  %v625_v38 = vmul.f32 %v624_v37, %v599_v23 }
0x16fb   :  { %v841_v31 = vsub.f32 1.0, %v840_v34 }
0x16fd   :  { %v842_v44 = vmul.f32 %v841_v31, %v821_v18  ;;  %v872_v31 = vpop.permute.xlu0 %871 }
0x16fe   :  { %v874_v18 = vmul.f32 %v872_v31, %v1591_v51 }
0x16ff   :  { %v843_v8 = vadd.f32 1.0, %v842_v44 }
0x1701   :  { %v844_v5 = vmul.f32 %v843_v8, %v818_v61 }
0x174a   :  { %v877_v4 = vpop.permute.xlu1 %876 }
0x174b   :  { %v879_v53 = vmul.f32 %v877_v4, %v1591_v51 }
0x174d   :  { %881 = vrot.lane.b32.xlu1 %v879_v53, %s1210_s7 }
0x1751   :  { %263 = vperm.xlu1 %1114, %v260_v47  }
0x1755   :  { %1116 = vset.pattern.permute.xlu1 %v1216_v2  ;;  %v696_v2 = vmul.f32 %v695_v6, %v675_v13 }
0x1756   :  { %409 = vperm.xlu1 %1116, %v406_v21   ;;  %v545_v21 = vmul.f32 %v544_v16, %v530_v48 }
0x1757   :  { %v697_v24 = vadd.f32 1.0, %v696_v2 }
0x1758   :  { %v546_v30 = vmul.f32 1.442695, %v545_v21 }
0x175a   :  { %1117 = vset.pattern.permute.xlu1 %v1218_v20  ;;  %v672_v20 = vmul.f32 0.5, %v1486_v3 }
0x175b   :  { %482 = vperm.xlu1 %1117, %v479_v12  }
0x175c   :  { %v698_v45 = vmul.f32 %v697_v24, %v672_v20 }
0x175f   :  { %1119 = vset.pattern.permute.xlu1 %v1222_v58  ;;  %v1620_v58 = vmul.f32 0.70710677, %v1436_v52 }
0x1760   :  { %628 = vperm.xlu1 %1119, %v625_v38  }
0x1761   :  { %v311_v25 = vand.u32 2147483647, %v1620_v58  ;;  %vm309_vm7 = vcmp.ge.f32.partialorder %v1620_v58, 0.0 }
0x1763   :  { %v312_v3 = vmul.f32 0.3275911, %v311_v25  ;;  %v325_v1 = vsub.f32 0.0, %v311_v25 }
0x1764   :  { %1120 = vset.pattern.permute.xlu1 %v1224_v14  ;;  %v1628_v14 = vmul.f32 0.70710677, %v1496_v39 }
0x1765   :  { %701 = vperm.xlu1 %1120, %v698_v45   ;;  %v313_v49 = vadd.f32 1.0, %v312_v3  ;;  %v326_v10 = vmul.f32 %v325_v1, %v311_v25 }
0x1766   :  { %v749_v50 = vand.u32 2147483647, %v1628_v14  ;;  %vm747_vm9 = vcmp.ge.f32.partialorder %v1628_v14, 0.0  ;;  %v1231_v14 = vmov 39  }
0x1767   :  { %1188 = vrcp.f32 %v313_v49  ;;  %v327_v35 = vmul.f32 1.442695, %v326_v10  ;;  %v310_v49 = vsel %vm309_vm7, 1.0, %v1230_v42 }
0x1768   :  { %v750_v29 = vmul.f32 0.3275911, %v749_v50  ;;  %v763_v28 = vsub.f32 0.0, %v749_v50 }
0x1769   :  { %1122 = vset.pattern.permute.xlu1 %v1228_v56  ;;  %v532_v56 = vadd.f32 1.0, %v531_v60 }
0x176a   :  { %847 = vperm.xlu1 %1122, %v844_v5   ;;  %v751_v4 = vadd.f32 1.0, %v750_v29  ;;  %v764_v6 = vmul.f32 %v763_v28, %v749_v50 }
0x176b   :  { %1190 = vrcp.f32 %v532_v56 }
0x176c   :  { %1192 = vrcp.f32 %v751_v4  ;;  %v765_v13 = vmul.f32 1.442695, %v764_v6 }
0x176d   :  { %1194 = vpow2.f32 %v327_v35 }
0x176e   :  { %1196 = vpow2.f32 %v546_v30  ;;  %1123 = vset.pattern.permute.xlu1 %v1231_v14 }
0x176f   :  { %1198 = vpow2.f32 %v765_v13 }
0x1771   :  { %v1189_v41 = vpop.eup %1188 }
0x1772   :  { %v316_v53 = vmul.f32 1.0614054, %v1189_v41 }
0x1774   :  { %v317_v57 = vadd.f32 -1.4531521, %v316_v53 }
0x1775   :  { %v1191_v54 = vpop.eup %1190 }
0x1776   :  { %v535_v11 = vmul.f32 1.0614054, %v1191_v54  ;;  %v1193_v59 = vpop.eup %1192  ;;  %v318_v62 = vmul.f32 %v1189_v41, %v317_v57  ;;  %v307_v57 = vmul.f32 0.5, %v1436_v52  ;;  %v745_v52 = vmul.f32 0.5, %v1496_v39 }
0x1777   :  { %v754_v63 = vmul.f32 1.0614054, %v1193_v59  ;;  %v1195_v24 = vpop.eup %1194 }
0x1778   :  { %v536_v17 = vadd.f32 -1.4531521, %v535_v11  ;;  %v319_v0 = vadd.f32 1.4214138, %v318_v62  ;;  %v1197_v5 = vpop.eup %1196  ;;  %v748_v62 = vsel %vm747_vm9, 1.0, %v1230_v42 }
0x1779   :  { %v755_v7 = vadd.f32 -1.4531521, %v754_v63  ;;  %v1199_v50 = vpop.eup %1198 }
0x177a   :  { %v537_v47 = vmul.f32 %v1191_v54, %v536_v17  ;;  %v320_v22 = vmul.f32 %v1189_v41, %v319_v0  ;;  %v526_v17 = vmul.f32 0.5, %v1466_v43 }
0x177b   :  { %v756_v26 = vmul.f32 %v1193_v59, %v755_v7 }
0x177c   :  { %v538_v15 = vadd.f32 1.4214138, %v537_v47  ;;  %v321_v19 = vadd.f32 -0.28449672, %v320_v22 }
0x177d   :  { %v757_v27 = vadd.f32 1.4214138, %v756_v26 }
0x177e   :  { %v539_v9 = vmul.f32 %v1191_v54, %v538_v15  ;;  %v322_v55 = vmul.f32 %v1189_v41, %v321_v19 }
0x177f   :  { %v758_v33 = vmul.f32 %v1193_v59, %v757_v27 }
0x1780   :  { %v540_v32 = vadd.f32 -0.28449672, %v539_v9  ;;  %v323_v34 = vadd.f32 0.2548296, %v322_v55 }
0x1781   :  { %v759_v37 = vadd.f32 -0.28449672, %v758_v33 }
0x1782   :  { %v541_v12 = vmul.f32 %v1191_v54, %v540_v32  ;;  %v324_v2 = vmul.f32 %v1189_v41, %v323_v34  ;;  %v529_v41 = vsel %vm528_vm8, 1.0, %v1230_v42 }
0x1783   :  { %v760_v38 = vmul.f32 %v1193_v59, %v759_v37 }
0x1784   :  { %v542_v23 = vadd.f32 0.2548296, %v541_v12  ;;  %v329_v20 = vmul.f32 %v1195_v24, %v324_v2  ;;  %v266_v2 = vlaneseq }
0x1785   :  { %v761_v61 = vadd.f32 0.2548296, %v760_v38  ;;  %v16_v38 = vld [vmem:[%s1660_s2 + $0x10] sm:$0xff] }
0x1786   :  { %v543_v8 = vmul.f32 %v1191_v54, %v542_v23  ;;  %v330_v25 = vsub.f32 1.0, %v329_v20  ;;  %v267_v23 = vshrl.u32 %v266_v2, 7 }
0x1787   :  { %v762_v48 = vmul.f32 %v1193_v59, %v761_v61 }
0x1788   :  { %v548_v3 = vmul.f32 %v1197_v5, %v543_v8  ;;  %v331_v60 = vmul.f32 %v330_v25, %v310_v49  ;;  %v268_v31 = vsub.s32 0, %v267_v23  ;;  %v341_v24 = vsub.s32 1, %v267_v23 }
0x1789   :  { %v767_v29 = vmul.f32 %v1199_v50, %v762_v48  ;;  %v414_v61 = vsub.s32 2, %v267_v23  ;;  %v487_v49 = vsub.s32 3, %v267_v23  ;;  %v560_v50 = vsub.s32 4, %v267_v23 }
0x178a   :  { %v549_v56 = vsub.f32 1.0, %v548_v3  ;;  %v332_v4 = vadd.f32 1.0, %v331_v60  ;;  %v342_v20 = vrot.slane %v16_v38, %v341_v24 }
0x178b   :  { %v768_v58 = vsub.f32 1.0, %v767_v29  ;;  %v415_v48 = vrot.slane %v16_v38, %v414_v61  ;;  %v488_v29 = vrot.slane %v16_v38, %v487_v49 }
0x178c   :  { %v550_v54 = vmul.f32 %v549_v56, %v529_v41  ;;  %v333_v11 = vmul.f32 %v332_v4, %v307_v57 }
0x178d   :  { %v769_v46 = vmul.f32 %v768_v58, %v748_v62  ;;  %v633_v58 = vsub.s32 5, %v267_v23 }
0x178e   :  { %v551_v59 = vadd.f32 1.0, %v550_v54 }
0x178f   :  { %v770_v0 = vadd.f32 1.0, %v769_v46  ;;  %v634_v46 = vrot.slane %v16_v38, %v633_v58 }
0x1790   :  { %v552_v63 = vmul.f32 %v551_v59, %v526_v17  ;;  %v706_v17 = vsub.s32 6, %v267_v23 }
0x1791   :  { %v771_v1 = vmul.f32 %v770_v0, %v745_v52 }
0x1792   :  { %v707_v52 = vrot.slane %v16_v38, %v706_v17 }
0x17bf   :  { %v882_v44 = vpop.permute.xlu1 %881 }
0x17c0   :  { %v884_v45 = vadd.f32 %v882_v44, %v874_v18  ;;  %v269_v18 = vrot.slane %v16_v38, %v268_v31 }
0x17c2   :  { %1200 = vtanh.f32 %v884_v45 }
0x17cc   :  { %v1201_v53 = vpop.eup %1200 }
0x17cd   :  { %887 = vrot.lane.b32.xlu0 %v1201_v53, %s1212_s8  ;;  %v561_v53 = vrot.slane %v16_v38, %v560_v50 }
0x17d0   :  { %v264_v44 = vpop.permute.xlu1 %263 }
0x17d1   :  { %336 = vperm.xlu0 %1115, %v333_v11   ;;  %v270_v8 = vmul.f32 %v269_v18, %v264_v44 }
0x17d5   :  { %1118 = vset.pattern.permute.xlu0 %v1220_v40  ;;  %v410_v25 = vpop.permute.xlu1 %409 }
0x17d6   :  { %555 = vperm.xlu0 %1118, %v552_v63   ;;  %v416_v56 = vmul.f32 %v415_v48, %v410_v25 }
0x17da   :  { %1121 = vset.pattern.permute.xlu0 %v1226_v36  ;;  %v483_v4 = vpop.permute.xlu1 %482 }
0x17db   :  { %774 = vperm.xlu0 %1121, %v771_v1   ;;  %v489_v57 = vmul.f32 %v488_v29, %v483_v4  ;;  %v779_v1 = vsub.s32 7, %v267_v23 }
0x17df   :  { %1124 = vset.pattern.permute.xlu0 %v1231_v14  ;;  %v629_v62 = vpop.permute.xlu1 %628 }
0x17e0   :  { %v635_v0 = vmul.f32 %v634_v46, %v629_v62 }
0x17e4   :  { %v702_v14 = vpop.permute.xlu1 %701 }
0x183f   :  { %v888_v47 = vpop.permute.xlu0 %887 }
0x1840   :  { %v890_v7 = vmul.f32 %v888_v47, %v1591_v51 }
0x1842   :  { %v892_v22 = vmul.f32 0.70710677, %v890_v7  ;;  %v891_v12 = vmul.f32 0.5, %v890_v7  ;;  %v708_v7 = vmul.f32 %v707_v52, %v702_v14 }
0x1844   :  { %v895_v10 = vand.u32 2147483647, %v892_v22  ;;  %vm893_vm10 = vcmp.ge.f32.partialorder %v892_v22, 0.0  ;;  %v780_v22 = vrot.slane %v16_v38, %v779_v1 }
0x1845   :  { %v894_v6 = vsel %vm893_vm10, 1.0, %v1230_v42  ;;  %v18_v42 = vld [vmem:[%s1660_s2 + $0x20] sm:$0xff] }
0x1846   :  { %v896_v43 = vmul.f32 0.3275911, %v895_v10  ;;  %v909_v40 = vsub.f32 0.0, %v895_v10  ;;  %v271_v3 = vadd.f32 %v270_v8, %v18_v42 }
0x1848   :  { %v897_v15 = vadd.f32 1.0, %v896_v43  ;;  %v910_v26 = vmul.f32 %v909_v40, %v895_v10  ;;  %v17_v10 = vld [vmem:[%s1660_s2 + $0x18] sm:$0xff] }
0x1849   :  { %v853_v40 = vrot.slane %v17_v10, %v268_v31 }
0x184a   :  { %1202 = vrcp.f32 %v897_v15  ;;  %v911_v35 = vmul.f32 1.442695, %v910_v26  ;;  %v848_v26 = vpop.permute.xlu1 %847 }
0x184c   :  { %1204 = vpow2.f32 %v911_v35  ;;  %v854_v35 = vmul.f32 %v853_v40, %v848_v26 }
0x1850   :  { %v337_v45 = vpop.permute.xlu0 %336 }
0x1851   :  { %v343_v5 = vmul.f32 %v342_v20, %v337_v45 }
0x1853   :  { %v344_v60 = vadd.f32 %v343_v5, %v271_v3 }
0x1854   :  { %v1203_v16 = vpop.eup %1202 }
0x1855   :  { %v900_v19 = vmul.f32 1.0614054, %v1203_v16  ;;  %v417_v41 = vadd.f32 %v416_v56, %v344_v60  ;;  %v556_v54 = vpop.permute.xlu0 %555 }
0x1856   :  { %v1205_v51 = vpop.eup %1204  ;;  %v562_v59 = vmul.f32 %v561_v53, %v556_v54 }
0x1857   :  { %v901_v39 = vadd.f32 -1.4531521, %v900_v19  ;;  %v490_v11 = vadd.f32 %v489_v57, %v417_v41 }
0x1859   :  { %v902_v9 = vmul.f32 %v1203_v16, %v901_v39  ;;  %v563_v63 = vadd.f32 %v562_v59, %v490_v11  ;;  %v926_v39 = vrot.slane %v17_v10, %v341_v24 }
0x185a   :  { %v775_v43 = vpop.permute.xlu0 %774 }
0x185b   :  { %v903_v36 = vadd.f32 1.4214138, %v902_v9  ;;  %v636_v47 = vadd.f32 %v635_v0, %v563_v63 }
0x185d   :  { %v904_v21 = vmul.f32 %v1203_v16, %v903_v36  ;;  %v709_v15 = vadd.f32 %v708_v7, %v636_v47 }
0x185f   :  { %v905_v27 = vadd.f32 -0.28449672, %v904_v21 }
0x1861   :  { %v906_v28 = vmul.f32 %v1203_v16, %v905_v27 }
0x1863   :  { %v907_v55 = vadd.f32 0.2548296, %v906_v28 }
0x1865   :  { %v908_v32 = vmul.f32 %v1203_v16, %v907_v55  ;;  %v781_v16 = vmul.f32 %v780_v22, %v775_v43 }
0x1867   :  { %v913_v30 = vmul.f32 %v1205_v51, %v908_v32  ;;  %v782_v19 = vadd.f32 %v781_v16, %v709_v15 }
0x1869   :  { %v914_v33 = vsub.f32 1.0, %v913_v30  ;;  %v855_v36 = vadd.f32 %v854_v35, %v782_v19 }
0x186b   :  { %v915_v34 = vmul.f32 %v914_v33, %v894_v6 }
0x186d   :  { %v916_v37 = vadd.f32 1.0, %v915_v34 }
0x186f   :  { %v917_v13 = vmul.f32 %v916_v37, %v891_v12 }
0x1871   :  { %920 = vperm.xlu1 %1123, %v917_v13  }
0x18f0   :  { %v921_v9 = vpop.permute.xlu1 %920 }
0x18f1   :  { %v927_v21 = vmul.f32 %v926_v39, %v921_v9 }
0x18f3   :  { %v928_v27 = vadd.f32 %v927_v21, %v855_v36 }
0x18f5   :  { %v929_v28 = vmax.f32 %v928_v27, 0.0 }
0x18f7   :  { %931 = vst.msk [vmem:[%s1661_s3] sm:$0xf] %vm930_vm11, %v929_v28 }

</bundles_post_ra>
